<compile_context>
chip_gen: v7x
topology: tpu7x:2x2x1
jax: 0.10.0
libtpu: 0.0.40
codegen_flags: <defaults>
</compile_context>

<pallas_src>
import jax
import jax.numpy as jnp
from jax.experimental import pallas as pl
from jax.experimental.pallas import tpu as pltpu


def init_params(key, c_in=4, c_mid=128, k=3, feat_dim=2048):
    """Deterministic synthetic backbone parameters.

    w1: [k, k, C_in, C_mid]  (offset-major conv weights, layout is ours)
    b1: [C_mid]   w2: [C_mid, feat_dim]   b2: [feat_dim]
    """
    k1, k2, k3, k4 = jax.random.split(key, 4)
    w1 = jax.random.normal(k1, (k, k, c_in, c_mid), jnp.float32) * 0.1
    b1 = jax.random.normal(k2, (c_mid,), jnp.float32) * 0.01
    w2 = jax.random.normal(k3, (c_mid, feat_dim), jnp.float32) * 0.05
    b2 = jax.random.normal(k4, (feat_dim,), jnp.float32) * 0.01
    return (w1, b1, w2, b2)


def extract_feat(img_nchw, params, *, tile_h=8, tile_n=None):
    """Pallas equivalent of BaseFewShotClassifier.extract_feat (neck is None)."""
    w1, b1, w2, b2 = params
    N, C, H, W = img_nchw.shape
    KH, KW, _, C1 = w1.shape
    assert (KH, KW) == (3, 3)
    FEAT = w2.shape[-1]
    if tile_n is None:
        tile_n = N
    assert H % tile_h == 0 and N % tile_n == 0
    num_ht = H // tile_h
    ROWW = (W + 2) * C        # flattened padded-row width (lane dim of the input tile)
    WC1 = W * C1              # lane-dense conv-output width

    # ----- layout-only glue (no compute, no 9x im2col blowup) ---------------
    x = jnp.transpose(img_nchw, (0, 2, 3, 1))                  # NCHW -> NHWC
    xp = jnp.pad(x, ((0, 0), (1, 1), (1, 1), (0, 0)))          # spatial zero-pad 1
    xp = xp.reshape(N, H + 2, ROWW).astype(jnp.bfloat16)       # bf16 halves HBM bytes
    # Overlapping row tiles with a 1-row halo on each side ((tile_h+2)/tile_h
    # duplication only) so BlockSpec stays simple and auto-pipelined.
    x_tiles = jnp.stack(
        [xp[:, t * tile_h:t * tile_h + tile_h + 2, :] for t in range(num_ht)],
        axis=0)                                                # [num_ht, N, tile_h+2, ROWW]

    # Banded (block-Toeplitz) conv weights: for row offset di, the conv over a
    # whole row tile is ONE 2D matmul  [tile_n*tile_h, (W+2)*C] @ [(W+2)*C, W*C1].
    w1_r = w1.reshape(3, 3 * C, C1)                            # (di, dj*C + c, c1)
    band = jnp.zeros((3, ROWW, WC1), jnp.float32)
    for xc in range(W):
        band = band.at[:, xc * C:xc * C + 3 * C, xc * C1:(xc + 1) * C1].set(w1_r)
    band = band.astype(jnp.bfloat16)

    b1_row = jnp.tile(b1.reshape(1, C1), (1, W)).astype(jnp.float32)   # [1, W*C1]
    w2_b = w2.astype(jnp.bfloat16)                                     # [C1, FEAT]
    b2_row = b2.reshape(1, FEAT).astype(jnp.float32)

    inv_hw = 1.0 / float(H * W)

    def kernel(x_ref, band_ref, b1_ref, w2_ref, b2_ref, out_ref, acc_ref):
        t = pl.program_id(1)

        @pl.when(t == 0)
        def _init():
            acc_ref[...] = jnp.zeros_like(acc_ref)

        xt = x_ref[...]                                 # [tile_n, tile_h+2, ROWW] bf16
        # 3x3 conv on this row tile: 3 banded matmuls on the MXU,
        # bf16 inputs / f32 accumulation, K=(W+2)*C, lane-dense W*C1 output.
        h = jnp.einsum("nrk,kc->nrc", xt[:, 0:tile_h, :], band_ref[0],
                       preferred_element_type=jnp.float32)
        h = h + jnp.einsum("nrk,kc->nrc", xt[:, 1:1 + tile_h, :], band_ref[1],
                           preferred_element_type=jnp.float32)
        h = h + jnp.einsum("nrk,kc->nrc", xt[:, 2:2 + tile_h, :], band_ref[2],
                           preferred_element_type=jnp.float32)
        h = jnp.maximum(h + b1_ref[...][None], 0.0)      # bias + ReLU in f32 (VPU)

        # Partial global-average-pool: sum the W lane-aligned 128-wide column
        # groups (cheap, 128-aligned slices), then the tile_h rows, and
        # accumulate into the persistent f32 scratch — h never stays live.
        s = h[:, :, 0:C1]
        for wc in range(1, W):
            s = s + h[:, :, wc * C1:(wc + 1) * C1]
        acc_ref[...] += s.sum(axis=1)                    # [tile_n, C1]

        @pl.when(t == pl.num_programs(1) - 1)
        def _finalize():
            pooled = acc_ref[...] * inv_hw               # mean = sum * 1/(H*W), f32
            feat = jnp.dot(pooled.astype(jnp.bfloat16), w2_ref[...],
                           preferred_element_type=jnp.float32)
            out_ref[...] = (feat + b2_ref[...]).astype(out_ref.dtype)

    grid = (N // tile_n, num_ht)   # (parallel N tiles, arbitrary reduction over rows)
    return pl.pallas_call(
        kernel,
        out_shape=jax.ShapeDtypeStruct((N, FEAT), jnp.float32),
        grid_spec=pltpu.PrefetchScalarGridSpec(
            num_scalar_prefetch=0,
            grid=grid,
            in_specs=[
                pl.BlockSpec((None, tile_n, tile_h + 2, ROWW),
                             lambda n, t: (t, n, 0, 0)),          # haloed row tile
                pl.BlockSpec((3, ROWW, WC1), lambda n, t: (0, 0, 0)),   # banded w1
                pl.BlockSpec((1, WC1), lambda n, t: (0, 0)),            # b1 (tiled)
                pl.BlockSpec((C1, FEAT), lambda n, t: (0, 0)),          # w2
                pl.BlockSpec((1, FEAT), lambda n, t: (0, 0)),           # b2
            ],
            out_specs=pl.BlockSpec((tile_n, FEAT), lambda n, t: (n, 0)),
            scratch_shapes=[pltpu.VMEM((tile_n, C1), jnp.float32)],
        ),
        compiler_params=pltpu.CompilerParams(
            dimension_semantics=("parallel", "arbitrary"),
            vmem_limit_bytes=32 * 1024 * 1024,
        ),
    )(x_tiles, band, b1_row, w2_b, b2_row)


def _reference(img_nchw, params):
    """Pure-JAX reference with the same bf16-input / f32-accumulate numerics."""
    w1, b1, w2, b2 = params
    N, C, H, W = img_nchw.shape
    C1 = w1.shape[-1]
    x = jnp.transpose(img_nchw, (0, 2, 3, 1)).astype(jnp.bfloat16).astype(jnp.float32)
    w1b = w1.astype(jnp.bfloat16).astype(jnp.float32)
    xp = jnp.pad(x, ((0, 0), (1, 1), (1, 1), (0, 0)))
    h = jnp.zeros((N, H, W, C1), jnp.float32)
    for di in range(3):
        for dj in range(3):
            h = h + jnp.einsum("nhwc,ck->nhwk",
                               xp[:, di:di + H, dj:dj + W, :], w1b[di, dj])
    h = jnp.maximum(h + b1, 0.0)
    pooled = jnp.mean(h, axis=(1, 2))
    pooled = pooled.astype(jnp.bfloat16).astype(jnp.float32)
    w2b = w2.astype(jnp.bfloat16).astype(jnp.float32)
    return pooled @ w2b + b2


if __name__ == "__main__":
    key = jax.random.PRNGKey(0)
    k_img, k_par = jax.random.split(key)

    # Small NCHW input consistent with the module's image interface.
    img = jax.random.normal(k_img, (2, 4, 16, 16), jnp.float32)
    params = init_params(k_par, c_in=4, c_mid=128, k=3, feat_dim=2048)

    feats = jax.block_until_ready(extract_feat(img, params, tile_h=8))
    ref = _reference(img, params)

    assert feats.shape == (2, 2048)
    err = float(jnp.max(jnp.abs(feats - ref)))
    assert jnp.allclose(feats, ref, atol=1e-2, rtol=1e-2), f"max abs err {err}"
    print("KERNEL_OK")
</pallas_src>

<mosaic_0001>
module attributes {stable_mosaic.version = 11 : i64} {
  func.func @kernel(%arg0: i32, %arg1: i32, %arg2: memref<1x2x10x72xbf16, #tpu.memory_space<vmem>>, %arg3: memref<3x72x2048xbf16, #tpu.memory_space<vmem>>, %arg4: memref<1x2048xf32, #tpu.memory_space<vmem>>, %arg5: memref<128x2048xbf16, #tpu.memory_space<vmem>>, %arg6: memref<1x2048xf32, #tpu.memory_space<vmem>>, %arg7: memref<2x2048xf32, #tpu.memory_space<vmem>>, %arg8: memref<2x128xf32, #tpu.memory_space<vmem>>) attributes {dimension_semantics = [#tpu.dimension_semantics<parallel>, #tpu.dimension_semantics<arbitrary>], iteration_bounds = array<i64: 1, 2>, scalar_prefetch = 0 : i64, scratch_operands = 1 : i64, tpu.core_type = #tpu.core_type<tc>, window_params = [{transform_indices = @transform_0, window_bounds = array<i64: 1, 2, 10, 72>}, {pipeline_mode = #tpu.pipeline_mode<synchronous>, transform_indices = @transform_1, window_bounds = array<i64: 3, 72, 2048>}, {pipeline_mode = #tpu.pipeline_mode<synchronous>, transform_indices = @transform_2, window_bounds = array<i64: 1, 2048>}, {pipeline_mode = #tpu.pipeline_mode<synchronous>, transform_indices = @transform_3, window_bounds = array<i64: 128, 2048>}, {pipeline_mode = #tpu.pipeline_mode<synchronous>, transform_indices = @transform_4, window_bounds = array<i64: 1, 2048>}, {transform_indices = @transform_5, window_bounds = array<i64: 2, 2048>}]} {
    %c0_i32 = arith.constant 0 : i32
    %0 = arith.cmpi eq, %arg1, %c0_i32 : i32
    %1 = arith.extui %0 : i1 to i32
    %c0_i32_0 = arith.constant 0 : i32
    %2 = arith.cmpi ne, %1, %c0_i32_0 : i32
    scf.if %2 {
      %cst_22 = arith.constant 0.000000e+00 : f32
      %63 = vector.broadcast %cst_22 : f32 to vector<2x128xf32>
      %c0_23 = arith.constant 0 : index
      %c0_24 = arith.constant 0 : index
      %64 = vector.load %arg8[%c0_23, %c0_24] : memref<2x128xf32, #tpu.memory_space<vmem>>, vector<2x128xf32>
      tpu.vector_store %arg8[%c0_23, %c0_24], %63 {strides = array<i32>} : memref<2x128xf32, #tpu.memory_space<vmem>>, vector<2x128xf32>,
    } else {
    }
    %c0 = arith.constant 0 : index
    %c0_1 = arith.constant 0 : index
    %c0_2 = arith.constant 0 : index
    %c0_3 = arith.constant 0 : index
    %3 = vector.load %arg2[%c0, %c0_1, %c0_2, %c0_3] : memref<1x2x10x72xbf16, #tpu.memory_space<vmem>>, vector<1x2x10x72xbf16>
    %4 = vector.shape_cast %3 : vector<1x2x10x72xbf16> to vector<2x10x72xbf16>
    %5 = vector.extract_strided_slice %4 {offsets = [0, 0, 0], sizes = [2, 8, 72], strides = [1, 1, 1]} : vector<2x10x72xbf16> to vector<2x8x72xbf16>
    %c0_4 = arith.constant 0 : index
    %c0_5 = arith.constant 0 : index
    %c0_6 = arith.constant 0 : index
    %6 = vector.load %arg3[%c0_4, %c0_5, %c0_6] : memref<3x72x2048xbf16, #tpu.memory_space<vmem>>, vector<1x72x2048xbf16>
    %7 = vector.shape_cast %6 : vector<1x72x2048xbf16> to vector<72x2048xbf16>
    "tpu.trace_start"() <{level = 10 : i32, message = "nrk,kc->nrc"}> : () -> ()
    %cst = arith.constant dense<0.000000e+00> : vector<2x8x2048xf32>
    %8 = tpu.matmul %5, %7, %cst {dimension_numbers = #tpu.dot_dimension_numbers<[2], [0], [0, 1], [1], [0, 0, 0, 1, 1, 1], [], []>} : vector<2x8x72xbf16>, vector<72x2048xbf16>, vector<2x8x2048xf32> -> vector<2x8x2048xf32>
    "tpu.trace_stop"() : () -> ()
    %9 = vector.extract_strided_slice %4 {offsets = [0, 1, 0], sizes = [2, 8, 72], strides = [1, 1, 1]} : vector<2x10x72xbf16> to vector<2x8x72xbf16>
    %c1 = arith.constant 1 : index
    %c0_7 = arith.constant 0 : index
    %c0_8 = arith.constant 0 : index
    %10 = vector.load %arg3[%c1, %c0_7, %c0_8] : memref<3x72x2048xbf16, #tpu.memory_space<vmem>>, vector<1x72x2048xbf16>
    %11 = vector.shape_cast %10 : vector<1x72x2048xbf16> to vector<72x2048xbf16>
    "tpu.trace_start"() <{level = 10 : i32, message = "nrk,kc->nrc"}> : () -> ()
    %cst_9 = arith.constant dense<0.000000e+00> : vector<2x8x2048xf32>
    %12 = tpu.matmul %9, %11, %cst_9 {dimension_numbers = #tpu.dot_dimension_numbers<[2], [0], [0, 1], [1], [0, 0, 0, 1, 1, 1], [], []>} : vector<2x8x72xbf16>, vector<72x2048xbf16>, vector<2x8x2048xf32> -> vector<2x8x2048xf32>
    "tpu.trace_stop"() : () -> ()
    %13 = arith.addf %8, %12 : vector<2x8x2048xf32>
    %14 = vector.extract_strided_slice %4 {offsets = [0, 2, 0], sizes = [2, 8, 72], strides = [1, 1, 1]} : vector<2x10x72xbf16> to vector<2x8x72xbf16>
    %c2 = arith.constant 2 : index
    %c0_10 = arith.constant 0 : index
    %c0_11 = arith.constant 0 : index
    %15 = vector.load %arg3[%c2, %c0_10, %c0_11] : memref<3x72x2048xbf16, #tpu.memory_space<vmem>>, vector<1x72x2048xbf16>
    %16 = vector.shape_cast %15 : vector<1x72x2048xbf16> to vector<72x2048xbf16>
    "tpu.trace_start"() <{level = 10 : i32, message = "nrk,kc->nrc"}> : () -> ()
    %cst_12 = arith.constant dense<0.000000e+00> : vector<2x8x2048xf32>
    %17 = tpu.matmul %14, %16, %cst_12 {dimension_numbers = #tpu.dot_dimension_numbers<[2], [0], [0, 1], [1], [0, 0, 0, 1, 1, 1], [], []>} : vector<2x8x72xbf16>, vector<72x2048xbf16>, vector<2x8x2048xf32> -> vector<2x8x2048xf32>
    "tpu.trace_stop"() : () -> ()
    %18 = arith.addf %13, %17 : vector<2x8x2048xf32>
    %c0_13 = arith.constant 0 : index
    %c0_14 = arith.constant 0 : index
    %19 = vector.load %arg4[%c0_13, %c0_14] : memref<1x2048xf32, #tpu.memory_space<vmem>>, vector<1x2048xf32>
    %20 = vector.shape_cast %19 : vector<1x2048xf32> to vector<1x1x2048xf32>
    %21 = vector.broadcast %20 : vector<1x1x2048xf32> to vector<2x8x2048xf32>
    %22 = arith.addf %18, %21 : vector<2x8x2048xf32>
    %cst_15 = arith.constant 0.000000e+00 : f32
    %23 = vector.broadcast %cst_15 : f32 to vector<2x8x2048xf32>
    %24 = arith.maximumf %22, %23 : vector<2x8x2048xf32>
    %25 = vector.extract_strided_slice %24 {offsets = [0, 0, 0], sizes = [2, 8, 128], strides = [1, 1, 1]} : vector<2x8x2048xf32> to vector<2x8x128xf32>
    %26 = vector.extract_strided_slice %24 {offsets = [0, 0, 128], sizes = [2, 8, 128], strides = [1, 1, 1]} : vector<2x8x2048xf32> to vector<2x8x128xf32>
    %27 = arith.addf %25, %26 : vector<2x8x128xf32>
    %28 = vector.extract_strided_slice %24 {offsets = [0, 0, 256], sizes = [2, 8, 128], strides = [1, 1, 1]} : vector<2x8x2048xf32> to vector<2x8x128xf32>
    %29 = arith.addf %27, %28 : vector<2x8x128xf32>
    %30 = vector.extract_strided_slice %24 {offsets = [0, 0, 384], sizes = [2, 8, 128], strides = [1, 1, 1]} : vector<2x8x2048xf32> to vector<2x8x128xf32>
    %31 = arith.addf %29, %30 : vector<2x8x128xf32>
    %32 = vector.extract_strided_slice %24 {offsets = [0, 0, 512], sizes = [2, 8, 128], strides = [1, 1, 1]} : vector<2x8x2048xf32> to vector<2x8x128xf32>
    %33 = arith.addf %31, %32 : vector<2x8x128xf32>
    %34 = vector.extract_strided_slice %24 {offsets = [0, 0, 640], sizes = [2, 8, 128], strides = [1, 1, 1]} : vector<2x8x2048xf32> to vector<2x8x128xf32>
    %35 = arith.addf %33, %34 : vector<2x8x128xf32>
    %36 = vector.extract_strided_slice %24 {offsets = [0, 0, 768], sizes = [2, 8, 128], strides = [1, 1, 1]} : vector<2x8x2048xf32> to vector<2x8x128xf32>
    %37 = arith.addf %35, %36 : vector<2x8x128xf32>
    %38 = vector.extract_strided_slice %24 {offsets = [0, 0, 896], sizes = [2, 8, 128], strides = [1, 1, 1]} : vector<2x8x2048xf32> to vector<2x8x128xf32>
    %39 = arith.addf %37, %38 : vector<2x8x128xf32>
    %40 = vector.extract_strided_slice %24 {offsets = [0, 0, 1024], sizes = [2, 8, 128], strides = [1, 1, 1]} : vector<2x8x2048xf32> to vector<2x8x128xf32>
    %41 = arith.addf %39, %40 : vector<2x8x128xf32>
    %42 = vector.extract_strided_slice %24 {offsets = [0, 0, 1152], sizes = [2, 8, 128], strides = [1, 1, 1]} : vector<2x8x2048xf32> to vector<2x8x128xf32>
    %43 = arith.addf %41, %42 : vector<2x8x128xf32>
    %44 = vector.extract_strided_slice %24 {offsets = [0, 0, 1280], sizes = [2, 8, 128], strides = [1, 1, 1]} : vector<2x8x2048xf32> to vector<2x8x128xf32>
    %45 = arith.addf %43, %44 : vector<2x8x128xf32>
    %46 = vector.extract_strided_slice %24 {offsets = [0, 0, 1408], sizes = [2, 8, 128], strides = [1, 1, 1]} : vector<2x8x2048xf32> to vector<2x8x128xf32>
    %47 = arith.addf %45, %46 : vector<2x8x128xf32>
    %48 = vector.extract_strided_slice %24 {offsets = [0, 0, 1536], sizes = [2, 8, 128], strides = [1, 1, 1]} : vector<2x8x2048xf32> to vector<2x8x128xf32>
    %49 = arith.addf %47, %48 : vector<2x8x128xf32>
    %50 = vector.extract_strided_slice %24 {offsets = [0, 0, 1664], sizes = [2, 8, 128], strides = [1, 1, 1]} : vector<2x8x2048xf32> to vector<2x8x128xf32>
    %51 = arith.addf %49, %50 : vector<2x8x128xf32>
    %52 = vector.extract_strided_slice %24 {offsets = [0, 0, 1792], sizes = [2, 8, 128], strides = [1, 1, 1]} : vector<2x8x2048xf32> to vector<2x8x128xf32>
    %53 = arith.addf %51, %52 : vector<2x8x128xf32>
    %54 = vector.extract_strided_slice %24 {offsets = [0, 0, 1920], sizes = [2, 8, 128], strides = [1, 1, 1]} : vector<2x8x2048xf32> to vector<2x8x128xf32>
    %55 = arith.addf %53, %54 : vector<2x8x128xf32>
    %c0_16 = arith.constant 0 : index
    %c0_17 = arith.constant 0 : index
    %56 = vector.load %arg8[%c0_16, %c0_17] : memref<2x128xf32, #tpu.memory_space<vmem>>, vector<2x128xf32>
    %cst_18 = arith.constant dense<0.000000e+00> : vector<2x128xf32>
    %57 = vector.multi_reduction <add>, %55, %cst_18 [1] : vector<2x8x128xf32> to vector<2x128xf32>
    %58 = arith.addf %56, %57 : vector<2x128xf32>
    %c0_19 = arith.constant 0 : index
    %c0_20 = arith.constant 0 : index
    %59 = vector.load %arg8[%c0_19, %c0_20] : memref<2x128xf32, #tpu.memory_space<vmem>>, vector<2x128xf32>
    tpu.vector_store %arg8[%c0_19, %c0_20], %58 {strides = array<i32>} : memref<2x128xf32, #tpu.memory_space<vmem>>, vector<2x128xf32>,
    %c1_i32 = arith.constant 1 : i32
    %60 = arith.cmpi eq, %arg1, %c1_i32 : i32
    %61 = arith.extui %60 : i1 to i32
    %c0_i32_21 = arith.constant 0 : i32
    %62 = arith.cmpi ne, %61, %c0_i32_21 : i32
    scf.if %62 {
      %c0_22 = arith.constant 0 : index
      %c0_23 = arith.constant 0 : index
      %63 = vector.load %arg8[%c0_22, %c0_23] : memref<2x128xf32, #tpu.memory_space<vmem>>, vector<2x128xf32>
      %cst_24 = arith.constant 3.906250e-03 : f32
      %64 = vector.broadcast %cst_24 : f32 to vector<2x128xf32>
      %65 = arith.mulf %63, %64 : vector<2x128xf32>
      %66 = arith.truncf %65 : vector<2x128xf32> to vector<2x128xbf16>
      %c0_25 = arith.constant 0 : index
      %c0_26 = arith.constant 0 : index
      %67 = vector.load %arg5[%c0_25, %c0_26] : memref<128x2048xbf16, #tpu.memory_space<vmem>>, vector<128x2048xbf16>
      %cst_27 = arith.constant dense<0.000000e+00> : vector<2x2048xf32>
      %68 = tpu.matmul %66, %67, %cst_27 {dimension_numbers = #tpu.dot_dimension_numbers<[1], [0], [0], [1], [0, 0, 1, 1], [], []>} : vector<2x128xbf16>, vector<128x2048xbf16>, vector<2x2048xf32> -> vector<2x2048xf32>
      %c0_28 = arith.constant 0 : index
      %c0_29 = arith.constant 0 : index
      %69 = vector.load %arg6[%c0_28, %c0_29] : memref<1x2048xf32, #tpu.memory_space<vmem>>, vector<1x2048xf32>
      %70 = vector.broadcast %69 : vector<1x2048xf32> to vector<2x2048xf32>
      %71 = arith.addf %68, %70 : vector<2x2048xf32>
      %c0_30 = arith.constant 0 : index
      %c0_31 = arith.constant 0 : index
      %72 = vector.load %arg7[%c0_30, %c0_31] : memref<2x2048xf32, #tpu.memory_space<vmem>>, vector<2x2048xf32>
      tpu.vector_store %arg7[%c0_30, %c0_31], %71 {strides = array<i32>} : memref<2x2048xf32, #tpu.memory_space<vmem>>, vector<2x2048xf32>,
    } else {
    }
    return
  }
  func.func @transform_0(%arg0: i32, %arg1: i32) -> (i32, i32, i32, i32) {
    %c0_i32 = arith.constant 0 : i32
    %c0_i32_0 = arith.constant 0 : i32
    %c0_i32_1 = arith.constant 0 : i32
    return %arg1, %arg0, %c0_i32, %c0_i32_0 : i32, i32, i32, i32
  }
  func.func @transform_1(%arg0: i32, %arg1: i32) -> (i32, i32, i32) {
    %c0_i32 = arith.constant 0 : i32
    %c0_i32_0 = arith.constant 0 : i32
    %c0_i32_1 = arith.constant 0 : i32
    %c0_i32_2 = arith.constant 0 : i32
    return %c0_i32, %c0_i32_0, %c0_i32_1 : i32, i32, i32
  }
  func.func @transform_2(%arg0: i32, %arg1: i32) -> (i32, i32) {
    %c0_i32 = arith.constant 0 : i32
    %c0_i32_0 = arith.constant 0 : i32
    %c0_i32_1 = arith.constant 0 : i32
    return %c0_i32, %c0_i32_0 : i32, i32
  }
  func.func @transform_3(%arg0: i32, %arg1: i32) -> (i32, i32) {
    %c0_i32 = arith.constant 0 : i32
    %c0_i32_0 = arith.constant 0 : i32
    %c0_i32_1 = arith.constant 0 : i32
    return %c0_i32, %c0_i32_0 : i32, i32
  }
  func.func @transform_4(%arg0: i32, %arg1: i32) -> (i32, i32) {
    %c0_i32 = arith.constant 0 : i32
    %c0_i32_0 = arith.constant 0 : i32
    %c0_i32_1 = arith.constant 0 : i32
    return %c0_i32, %c0_i32_0 : i32, i32
  }
  func.func @transform_5(%arg0: i32, %arg1: i32) -> (i32, i32) {
    %c0_i32 = arith.constant 0 : i32
    %c0_i32_0 = arith.constant 0 : i32
    return %arg0, %c0_i32 : i32, i32
  }
}

</mosaic_0001>

<bundles_post_ra>
// kernel: tpu_custom_call.1
= control target key start
LH: loop header
LB: loop body
LE: loop exit
PB: predicated region body
PF: predicated region fallthrough
CT: control target
= control target key end

     0   :  { %10 = vsyncpa [#allocation4], 0  ;;  %s5604_s0 = inlined_call_operand.vmem [shape: bf16[2,2,10,72], index: 0, kind: input, shape index: {}]   ;;  %s5605_s1 = inlined_call_operand.hbm [shape: bf16[3,72,2048], index: 1, kind: input, shape index: {}]   ;;  %s5606_s2 = inlined_call_operand.vmem [shape: f32[1,2048], index: 2, kind: input, shape index: {}]   ;;  %s5607_s3 = inlined_call_operand.hbm [shape: bf16[128,2048], index: 3, kind: input, shape index: {}]   ;;  %s5608_s4 = inlined_call_operand.vmem [shape: f32[1,2048], index: 4, kind: input, shape index: {}]   ;;  %s5609_s5 = inlined_call_operand.hbm [shape: f32[2,2048], index: 5, kind: output, shape index: {}]  }
   0x1   :  { %11 = vsyncpa [#allocation7], 0 }
   0x2   :  { %12 = vsyncpa [#allocation5], 0  ;;  %s5193_s18 = smov 0   ;;  %s5195_s19 = smov 0  }
   0x3   :  { %s5197_s20 = smov 0  }
   0x4 LB: > { %s4427_s21 = sadd.s32 4294967295, %s5152_s20   ;;  %s27_s22 = sadd.s32 1, %s5148_s19  ;;  %s5152_s20 = sphi %s5197_s20, %s18_s20   ;;  %s5148_s19 = sphi %s5195_s19, %s5624_s19   ;;  %s5144_s18 = sphi %s5193_s18, %s5623_s18  }
   0x5   : > { %p28_p0 = scmp.ge.s32.totalorder %s27_s22, 2  ;;  %p4428_p1 = scmp.ge.s32.totalorder %s5152_s20, 1 }
   0x6   : > { %p173_p2 = scmp.lt.s32.totalorder %s5152_s20, 3  ;;  %p5220_p4 = scmp.eq.s32.totalorder %s4427_s21, 0 }
   0x7   : > { %s5626_s22 = smov (%p28_p0, %s27_s22), 0  ;;  %s5154_s25 = smov [#allocation3]  }
   0x8   : > { %p5214_p3 = pnand %p4428_p1, %p173_p2  ;;  %s185_s26 = sshll.u32 %s5154_s25, 4  ;;  %s186_s26 = int_to_ptr.vmem [resolvable:$true] %s185_s26 }
   0x9   : > { %s5614_s24 = scalar_select %p5220_p4, 1, 0 }
   0xa   : > { %s5613_s23 = scalar_select %p5214_p3, 1, 0 }
   0xb   : > { %p4941_p5 = pneg %p5214_p3  ;;  %s5155_s28 = smov [#allocation6]  }
   0xc   : > { %s201_s29 = sshll.u32 %s5155_s28, 4  ;;  %s5036_s7 = scalar_lea.hbm %s5605_s1, 27648  ;;  %s5232_s29 = int_to_ptr.vmem [resolvable:$true] %s201_s29 }
   0xd   : > { %p5228_p6 = pnand %p5220_p4, %p4941_p5  ;;  %p5037_p7 = scmp.ne.s32.totalorder %s5605_s1, %s5036_s7 }
   0xe   : > { %p5043_p11 = scmp.lt.u32.totalorder %s5036_s7, %s5605_s1 }
   0xf   : > { %p5038_p8 = pneg %p5228_p6 }
  0x11   : > { %p5039_p9 = pnand %p5038_p8, %p5037_p7 }
  0x13   : > { %p5040_p10 = pneg %p5039_p9 }
  0x15   : > { %p5045_p12 = pnand %p5043_p11, %p5040_p10 }
  0x17   : > { %5048 = shalt.err (!%p5045_p12)
}
  0x18   : > { %s5049_s12 = scalar_lea.vmem %s186_s26, 27648  ;;  %p5057_p2 = scmp.lt.s32.totalorder %s186_s26, %s186_s26 }
  0x19   : > { %p5050_p13 = scmp.ne.s32.totalorder %s186_s26, %s5049_s12  ;;  %p5058_p5 = scmp.lt.s32.totalorder %s5049_s12, %s5049_s12 }
  0x1b   : > { %p5052_p0 = pnand %p5050_p13, %p5038_p8  ;;  %p5059_p4 = por %p5058_p5, %p5057_p2 }
  0x1d   : > { %p5053_p1 = pneg %p5052_p0 }
  0x1f   : > { %p5060_p3 = pnand %p5059_p4, %p5053_p1 }
  0x21   : > { %5063 = shalt.err (!%p5060_p3)
}
  0x22   : > { %s5156_s13 = smov 1024   ;;  %s5157_s14 = smov 64  }
  0x23   : > { %4944 = dma.hbm_to_vmem [thread:$0]  (!%p5228_p6), %s5605_s1, 27648, %s186_s26, [#allocation4], %s5156_s13, %s5156_s13, %s5157_s14  }
  0x24   : > { %s5064_s28 = scalar_lea.hbm %s5607_s3, 16384 }
  0x25   : > { %p5065_p7 = scmp.ne.s32.totalorder %s5607_s3, %s5064_s28  ;;  %p5071_p9 = scmp.lt.u32.totalorder %s5064_s28, %s5607_s3 }
  0x27   : > { %p5067_p3 = pnand %p5065_p7, %p5038_p8 }
  0x29   : > { %p5068_p4 = pneg %p5067_p3 }
  0x2b   : > { %p5073_p10 = pnand %p5071_p9, %p5068_p4 }
  0x2d   : > { %5076 = shalt.err (!%p5073_p10)
}
  0x2e   : > { %s5077_s26 = scalar_lea.vmem %s5232_s29, 16384  ;;  %p5085_p0 = scmp.lt.s32.totalorder %s5232_s29, %s5232_s29 }
  0x2f   : > { %p5078_p11 = scmp.ne.s32.totalorder %s5232_s29, %s5077_s26  ;;  %p5086_p1 = scmp.lt.s32.totalorder %s5077_s26, %s5077_s26 }
  0x31   : > { %p5080_p12 = pnand %p5078_p11, %p5038_p8  ;;  %p5087_p2 = por %p5086_p1, %p5085_p0 }
  0x33   : > { %p5081_p13 = pneg %p5080_p12 }
  0x35   : > { %p5088_p5 = pnand %p5087_p2, %p5081_p13 }
  0x37   : > { %5091 = shalt.err (!%p5088_p5)
}
  0x38   : > { %4947 = dma.hbm_to_vmem [thread:$0]  (!%p5228_p6), %s5607_s3, 16384, %s5232_s29, [#allocation7], %s5156_s13, %s5156_s13, %s5157_s14  }
  0x39   : > { %p5616_p7 = scmp.ne.s32.totalorder %s5613_s23, 0 }
  0x3a   : > { %p5617_p3 = scmp.ne.s32.totalorder (!%p5616_p7), %s5614_s24, 0 }
  0x3b   : > { %234 = sbr.rel (%p5616_p7) target bundleno = 919 (0x397), region = 40 }
  0x42   : > { %5131 = dma.done.wait (%p5617_p3), [#allocation4], 27648  }
  0x43   : > { %5133 = vsyncadd (%p5617_p3), [#allocation4], 4294939648 }
  0x44   : > { %5135 = dma.done.wait (%p5617_p3), [#allocation7], 16384  }
  0x45   : > { %5137 = vsyncadd (%p5617_p3), [#allocation7], 4294950912  ;;  %p267_p8 = scmp.lt.s32.totalorder %s5144_s18, 1  ;;  %p4437_p6 = scmp.ne.s32.totalorder %s5144_s18, 0 }
  0x46   : > { %v5158_v0 = vmov (!%p4437_p6), 0.0  }
  0x47   : > { %s268_s27 = scalar_select %p267_p8, %s5144_s18, 1 }
  0x48   : > { %281 = sbr.rel (%p4437_p6) target bundleno = 79 (0x4f), region = 52  ;;  %282 = vst [vmem:[#allocation2] sm:$0x3] (!%p4437_p6), %v5158_v0 }
  0x49   : > { %s4864_s29 = sshll.u32 %s268_s27, 4 }
  0x4a   : > { %s5296_s12 = scalar_lea.vmem %s5604_s0, %s4864_s29 }
  0x4f PF: > { %v360_v1 = vld [vmem:[#allocation3 + $0x240] sm:$0xff]  ;;  %v361_v3 = vld [vmem:[#allocation3 + $0x248] sm:$0xff]  ;;  %v5159_v9 = vmov 0   ;;  %vm432_vm0 = vsmask.f32 3328  ;;  %vm830_vm2 = vcmask 1043456  }
  0x50   : > { %v368_v2 = vld [vmem:[#allocation3 + $0x280] sm:$0xff]  ;;  %v369_v5 = vld [vmem:[#allocation3 + $0x288] sm:$0xff]  ;;  %911 = vmatprep.mubr.bf16.mxu0 %v5159_v9  ;;  %954 = vmatprep.mubr.bf16.mxu1 %v5159_v9  ;;  %vm433_vm1 = vsmask.f32 7440  ;;  %v362_v57 = vld [vmem:[#allocation3 + $0x250] sm:$0xff]  ;;  %vm826_vm4 = vcmask 588800  }
  0x51   : > { %v4440_v4 = vcombine.high %v360_v1, %v368_v2  ;;  %v4439_v6 = vcombine.low %v360_v1, %v368_v2  ;;  %v376_v7 = vld [vmem:[#allocation3 + $0x2c0] sm:$0xff]  ;;  %v4442_v10 = vcombine.high %v361_v3, %v369_v5  ;;  %v4441_v11 = vcombine.low %v361_v3, %v369_v5  ;;  %v377_v13 = vld [vmem:[#allocation3 + $0x2c8] sm:$0xff]  ;;  %vm5321_vm3 = vmor %vm432_vm0, %vm433_vm1  ;;  %p4731_p4 = scmp.ne.s32.totalorder %s5144_s18, 1 }
  0x52   : > { %v384_v8 = vld [vmem:[#allocation3 + $0x300] sm:$0xff]  ;;  %v385_v14 = vld [vmem:[#allocation3 + $0x308] sm:$0xff]  ;;  %v370_v58 = vld [vmem:[#allocation3 + $0x290] sm:$0xff]  ;;  %vm2058_vm5 = vcmask 1042432   ;;  %vm2059_vm6 = vcmask 1046532   ;;  %vm3052_vm8 = vcmask 1041409  }
  0x53   : > { %v4456_v12 = vcombine.high %v376_v7, %v384_v8  ;;  %v392_v15 = vld [vmem:[#allocation3 + $0x340] sm:$0xff]  ;;  %879 = vmatprep.subr.bf16.mxu0 %v4440_v4  ;;  %v4458_v16 = vcombine.high %v377_v13, %v385_v14  ;;  %v393_v18 = vld [vmem:[#allocation3 + $0x348] sm:$0xff]  ;;  %922 = vmatprep.subr.bf16.mxu1 %v4442_v10  ;;  %v4455_v20 = vcombine.low %v376_v7, %v384_v8  ;;  %v363_v62 = vld [vmem:[#allocation3 + $0x258] sm:$0xff] }
  0x54   : > { %v400_v17 = vld [vmem:[#allocation3 + $0x380] sm:$0xff]  ;;  %v401_v19 = vld [vmem:[#allocation3 + $0x388] sm:$0xff]  ;;  %880 = vmatpush1.bf16.msra.mxu0 %v4439_v6  ;;  %923 = vmatpush1.bf16.msra.mxu1 %v4441_v11  ;;  %v4457_v21 = vcombine.low %v377_v13, %v385_v14  ;;  %v371_v63 = vld [vmem:[#allocation3 + $0x298] sm:$0xff]  ;;  %v4444_v3 = vcombine.high %v362_v57, %v370_v58  ;;  %v4443_v13 = vcombine.low %v362_v57, %v370_v58 }
  0x55   : > { %881 = vmatprep.subr.bf16.mxu0 %v4456_v12  ;;  %v4472_v22 = vcombine.high %v392_v15, %v400_v17  ;;  %v408_v23 = vld [vmem:[#allocation3 + $0x3c0] sm:$0xff]  ;;  %924 = vmatprep.subr.bf16.mxu1 %v4458_v16  ;;  %v4474_v24 = vcombine.high %v393_v18, %v401_v19  ;;  %v409_v26 = vld [vmem:[#allocation3 + $0x3c8] sm:$0xff]  ;;  %v4471_v30 = vcombine.low %v392_v15, %v400_v17  ;;  %v378_v7 = vld [vmem:[#allocation3 + $0x2d0] sm:$0xff] }
  0x56   : > { %v416_v25 = vld [vmem:[#allocation3 + $0x400] sm:$0xff]  ;;  %v417_v27 = vld [vmem:[#allocation3 + $0x408] sm:$0xff]  ;;  %v4473_v31 = vcombine.low %v393_v18, %v401_v19  ;;  %v4446_v5 = vcombine.high %v363_v62, %v371_v63  ;;  %v386_v8 = vld [vmem:[#allocation3 + $0x310] sm:$0xff]  ;;  %v4445_v14 = vcombine.low %v363_v62, %v371_v63 }
  0x57   : > { %v5302_v28 = vld [vmem:[%s5296_s12] sm:$0xf]  ;;  %v5305_v29 = vld [vmem:[%s5296_s12 + $0x4] sm:$0x1]  ;;  %v5308_v32 = vld [vmem:[%s5296_s12 + $0x8] sm:$0xf]  ;;  %v4488_v36 = vcombine.high %v408_v23, %v416_v25  ;;  %v4490_v37 = vcombine.high %v409_v26, %v417_v27  ;;  %v4487_v46 = vcombine.low %v408_v23, %v416_v25  ;;  %v4489_v48 = vcombine.low %v409_v26, %v417_v27 }
  0x58   : > { %882 = vmatpush1.bf16.msra.mxu0 %v4455_v20  ;;  %v5311_v33 = vld [vmem:[%s5296_s12 + $0xc] sm:$0x1]  ;;  %v436_v34 = vshrl.u32 %v5302_v28, 16  ;;  %v439_v35 = vshll.u32 %v5302_v28, 16  ;;  %925 = vmatpush1.bf16.msra.mxu1 %v4457_v21  ;;  %v445_v38 = vshll.u32 %v5305_v29, 16  ;;  %v450_v39 = vshrl.u32 %v5308_v32, 16  ;;  %vm5359_vm7 = vmor %vm2058_vm5, %vm2059_vm6 }
  0x59   : > { %883 = vmatprep.subr.bf16.mxu0 %v4472_v22  ;;  %926 = vmatprep.subr.bf16.mxu1 %v4474_v24  ;;  %v424_v40 = vld [vmem:[#allocation3 + $0x440] sm:$0xff]  ;;  %v425_v41 = vld [vmem:[#allocation3 + $0x448] sm:$0xff]  ;;  %v453_v44 = vshll.u32 %v5308_v32, 16  ;;  %v459_v45 = vshll.u32 %v5311_v33, 16  ;;  %v379_v11 = vld [vmem:[#allocation3 + $0x2d8] sm:$0xff]  ;;  %v4460_v15 = vcombine.high %v378_v7, %v386_v8  ;;  %v4459_v21 = vcombine.low %v378_v7, %v386_v8 }
  0x5a   : > { %v438_v42 = vrot.slane %v436_v34, 4  ;;  %v441_v43 = vrot.slane %v439_v35, 5  ;;  %v452_v47 = vrot.slane %v450_v39, 4  ;;  %v447_v50 = vrot.slane %v445_v38, 5  ;;  %v387_v12 = vld [vmem:[#allocation3 + $0x318] sm:$0xff]  ;;  %v394_v17 = vld [vmem:[#allocation3 + $0x350] sm:$0xff] }
  0x5b   : > { %v455_v51 = vrot.slane %v453_v44, 5  ;;  %v4504_v52 = vcombine.high %v424_v40, %v424_v40  ;;  %v4506_v53 = vcombine.high %v425_v41, %v425_v41  ;;  %v4503_v54 = vcombine.low %v424_v40, %v424_v40  ;;  %v402_v18 = vld [vmem:[#allocation3 + $0x390] sm:$0xff]  ;;  %v395_v19 = vld [vmem:[#allocation3 + $0x358] sm:$0xff]  ;;  %v388_v55 = vld [vmem:[#allocation3 + $0x320] sm:$0xff] }
  0x5c   : > { %884 = vmatpush1.bf16.msra.mxu0 %v4471_v30  ;;  %v442_v49 = vor.u32 %v441_v43, %v438_v42  ;;  %927 = vmatpush1.bf16.msra.mxu1 %v4473_v31  ;;  %v4505_v56 = vcombine.low %v425_v41, %v425_v41  ;;  %v461_v61 = vrot.slane %v459_v45, 5  ;;  %v4462_v16 = vcombine.high %v379_v11, %v387_v12  ;;  %v403_v20 = vld [vmem:[#allocation3 + $0x398] sm:$0xff]  ;;  %v410_v25 = vld [vmem:[#allocation3 + $0x3d0] sm:$0xff]  ;;  %v364_v45 = vld [vmem:[#allocation3 + $0x260] sm:$0xff] }
  0x5d   : > { %885 = vmatprep.subr.bf16.mxu0 %v4488_v36  ;;  %928 = vmatprep.subr.bf16.mxu1 %v4490_v37  ;;  %v456_v60 = vor.u32 %v455_v51, %v452_v47  ;;  %v832_v2 = vsel %vm830_vm2, %v4503_v54, 0  ;;  %v4461_v22 = vcombine.low %v379_v11, %v387_v12  ;;  %v4476_v23 = vcombine.high %v394_v17, %v402_v18  ;;  %v418_v26 = vld [vmem:[#allocation3 + $0x410] sm:$0xff]  ;;  %v411_v27 = vld [vmem:[#allocation3 + $0x3d8] sm:$0xff]  ;;  %v365_v47 = vld [vmem:[#allocation3 + $0x268] sm:$0xff] }
  0x5e   : > { %v443_v59 = vrot.slane %v442_v49, 4  ;;  %v838_v4 = vsel %vm830_vm2, %v4505_v56, 0  ;;  %v4478_v24 = vcombine.high %v395_v19, %v403_v20  ;;  %v419_v30 = vld [vmem:[#allocation3 + $0x418] sm:$0xff]  ;;  %v4475_v31 = vcombine.low %v394_v17, %v402_v18  ;;  %v426_v37 = vld [vmem:[#allocation3 + $0x450] sm:$0xff]  ;;  %v380_v54 = vld [vmem:[#allocation3 + $0x2e0] sm:$0xff] }
  0x5f   : > { %v457_v1 = vrot.slane %v456_v60, 4  ;;  %v4477_v34 = vcombine.low %v395_v19, %v403_v20  ;;  %v4492_v35 = vcombine.high %v410_v25, %v418_v26  ;;  %v4494_v36 = vcombine.high %v411_v27, %v419_v30  ;;  %v427_v38 = vld [vmem:[#allocation3 + $0x458] sm:$0xff]  ;;  %v381_v56 = vld [vmem:[#allocation3 + $0x2e8] sm:$0xff]  ;;  %v396_v62 = vld [vmem:[#allocation3 + $0x360] sm:$0xff] }
  0x60   : > { %886 = vmatpush1.bf16.msra.mxu0 %v4487_v46  ;;  %v448_v0 = vsel %vm5321_vm3, %v443_v59, %v447_v50  ;;  %929 = vmatpush1.bf16.msra.mxu1 %v4489_v48  ;;  %v4491_v39 = vcombine.low %v410_v25, %v418_v26  ;;  %v4493_v40 = vcombine.low %v411_v27, %v419_v30  ;;  %v372_v46 = vld [vmem:[#allocation3 + $0x2a0] sm:$0xff]  ;;  %v373_v48 = vld [vmem:[#allocation3 + $0x2a8] sm:$0xff]  ;;  %v374_v25 = vld [vmem:[#allocation3 + $0x2b0] sm:$0xff] }
  0x61   : > { %4519 = vmatprep.subr.msk.bf16.mxu0 %vm830_vm2, %v4504_v52  ;;  %4521 = vmatprep.subr.msk.bf16.mxu1 %vm830_vm2, %v4506_v53  ;;  %v462_v6 = vsel %vm5321_vm3, %v457_v1, %v461_v61  ;;  %v4508_v41 = vcombine.high %v426_v37, %v426_v37  ;;  %v4507_v42 = vcombine.low %v426_v37, %v426_v37  ;;  %v389_v57 = vld [vmem:[#allocation3 + $0x328] sm:$0xff]  ;;  %v404_v63 = vld [vmem:[#allocation3 + $0x3a0] sm:$0xff]  ;;  %v367_v26 = vld [vmem:[#allocation3 + $0x278] sm:$0xff] }
  0x62   : > { %v5333_v10 = vcombine.low %v448_v0, %v462_v6  ;;  %v4510_v43 = vcombine.high %v427_v38, %v427_v38  ;;  %v4509_v44 = vcombine.low %v427_v38, %v427_v38  ;;  %v4448_v50 = vcombine.high %v364_v45, %v372_v46  ;;  %v397_v0 = vld [vmem:[#allocation3 + $0x368] sm:$0xff]  ;;  %v412_v6 = vld [vmem:[#allocation3 + $0x3e0] sm:$0xff]  ;;  %v375_v27 = vld [vmem:[#allocation3 + $0x2b8] sm:$0xff] }
  0x63   : > { %v844_v49 = vsel %vm830_vm2, %v4507_v42, 0  ;;  %v5345_v51 = vcombine.low %v5302_v28, %v5308_v32  ;;  %v4450_v53 = vcombine.high %v365_v47, %v373_v48  ;;  %v4447_v58 = vcombine.low %v364_v45, %v372_v46  ;;  %v405_v1 = vld [vmem:[#allocation3 + $0x3a8] sm:$0xff]  ;;  %v420_v7 = vld [vmem:[#allocation3 + $0x420] sm:$0xff]  ;;  %v390_v37 = vld [vmem:[#allocation3 + $0x330] sm:$0xff] }
  0x64   : > { %888 = vmatpush1.bf16.msra.mxu0 %v832_v2  ;;  %931 = vmatpush1.bf16.msra.mxu1 %v838_v4  ;;  %v850_v52 = vsel %vm830_vm2, %v4509_v44, 0  ;;  %v4449_v59 = vcombine.low %v365_v47, %v373_v48  ;;  %v4464_v60 = vcombine.high %v380_v54, %v388_v55  ;;  %v4466_v61 = vcombine.high %v381_v56, %v389_v57  ;;  %v413_v8 = vld [vmem:[#allocation3 + $0x3e8] sm:$0xff]  ;;  %v383_v38 = vld [vmem:[#allocation3 + $0x2f8] sm:$0xff] }
  0x65   : > { %965 = vmatprep.subr.bf16.mxu0 %v4444_v3  ;;  %1008 = vmatprep.subr.bf16.mxu1 %v4446_v5  ;;  %v4463_v2 = vcombine.low %v380_v54, %v388_v55  ;;  %v4465_v3 = vcombine.low %v381_v56, %v389_v57  ;;  %v4480_v4 = vcombine.high %v396_v62, %v404_v63  ;;  %v421_v11 = vld [vmem:[#allocation3 + $0x428] sm:$0xff]  ;;  %v4633_v44 = vrot.slane %v5308_v32, 9  ;;  %v407_v32 = vld [vmem:[#allocation3 + $0x3b8] sm:$0xff]  ;;  %v414_v57 = vld [vmem:[#allocation3 + $0x3f0] sm:$0xff] }
  0x66   : > { %v4482_v5 = vcombine.high %v397_v0, %v405_v1  ;;  %v4479_v12 = vcombine.low %v396_v62, %v404_v63  ;;  %v429_v17 = vld [vmem:[#allocation3 + $0x468] sm:$0xff]  ;;  %v4495_v18 = vcombine.low %v412_v6, %v420_v7  ;;  %v4497_v19 = vcombine.low %v413_v8, %v421_v11 }
  0x67   : > { %4520 = vmatmul.mubr.msk.bf16.vlgmr.msra.gmra.mrb[0].mxu0 %vm826_vm4, %v5333_v10  ;;  %4522 = vmatmul.mubr.msk.bf16.vlgmr.msra.gmra.mrb[0].mxu1 %vm826_vm4, %v5333_v10  ;;  %v2067_v45 = vrot.slane %v5311_v33, 5  ;;  %v4453_v46 = vcombine.low %v367_v26, %v375_v27 }
  0x68   : > { %966 = vmatpush1.bf16.msra.mxu0 %v4443_v13  ;;  %1009 = vmatpush1.bf16.msra.mxu1 %v4445_v14  ;;  %v4481_v13 = vcombine.low %v397_v0, %v405_v1  ;;  %v4496_v14 = vcombine.high %v412_v6, %v420_v7  ;;  %v430_v1 = vld [vmem:[#allocation3 + $0x470] sm:$0xff] }
  0x69   : > { %967 = vmatprep.subr.bf16.mxu0 %v4460_v15  ;;  %1010 = vmatprep.subr.bf16.mxu1 %v4462_v16  ;;  %v4498_v15 = vcombine.high %v413_v8, %v421_v11  ;;  %v428_v16 = vld [vmem:[#allocation3 + $0x460] sm:$0xff]  ;;  %v4515_v6 = vcombine.low %v430_v1, %v430_v1 }
  0x6a   : > { %997 = vmatprep.mubr.bf16.mxu0 %v5159_v9  ;;  %1040 = vmatprep.mubr.bf16.mxu1 %v5159_v9  ;;  %v4512_v20 = vcombine.high %v428_v16, %v428_v16  ;;  %v287_v11 = vld [vmem:[#allocation3] sm:$0xff] }
  0x6c   : > { %968 = vmatpush1.bf16.msra.mxu0 %v4459_v21  ;;  %1011 = vmatpush1.bf16.msra.mxu1 %v4461_v22  ;;  %v4511_v21 = vcombine.low %v428_v16, %v428_v16  ;;  %v4514_v22 = vcombine.high %v429_v17, %v429_v17 }
  0x6d   : > { %969 = vmatprep.subr.bf16.mxu0 %v4476_v23  ;;  %1012 = vmatprep.subr.bf16.mxu1 %v4478_v24  ;;  %v4513_v23 = vcombine.low %v429_v17, %v429_v17  ;;  %v366_v24 = vld [vmem:[#allocation3 + $0x270] sm:$0xff] }
  0x6e   : > { %v856_v30 = vsel %vm830_vm2, %v4511_v21, 0  ;;  %v4451_v42 = vcombine.low %v366_v24, %v374_v25  ;;  %v304_v21 = vld [vmem:[#allocation3 + $0x88] sm:$0xff] }
  0x70   : > { %970 = vmatpush1.bf16.msra.mxu0 %v4475_v31  ;;  %1013 = vmatpush1.bf16.msra.mxu1 %v4477_v34  ;;  %v4452_v31 = vcombine.high %v366_v24, %v374_v25  ;;  %v862_v34 = vsel %vm830_vm2, %v4513_v23, 0 }
  0x71   : > { %971 = vmatprep.subr.bf16.mxu0 %v4492_v35  ;;  %1014 = vmatprep.subr.bf16.mxu1 %v4494_v36  ;;  %v4454_v35 = vcombine.high %v367_v26, %v375_v27  ;;  %v382_v36 = vld [vmem:[#allocation3 + $0x2f0] sm:$0xff]  ;;  %v319_v27 = vld [vmem:[#allocation3 + $0x100] sm:$0xff] }
  0x72   : > { %v4468_v47 = vcombine.high %v382_v36, %v390_v37 }
  0x74   : > { %972 = vmatpush1.bf16.msra.mxu0 %v4491_v39  ;;  %1015 = vmatpush1.bf16.msra.mxu1 %v4493_v40  ;;  %v391_v39 = vld [vmem:[#allocation3 + $0x338] sm:$0xff]  ;;  %v343_v40 = vld [vmem:[#allocation3 + $0x1c0] sm:$0xff] }
  0x75   : > { %4523 = vmatprep.subr.msk.bf16.mxu0 %vm830_vm2, %v4508_v41  ;;  %4525 = vmatprep.subr.msk.bf16.mxu1 %vm830_vm2, %v4510_v43  ;;  %v4632_v41 = vrot.slane %v5302_v28, 9  ;;  %v2063_v43 = vrot.slane %v5305_v29, 5  ;;  %v4470_v48 = vcombine.high %v383_v38, %v391_v39  ;;  %v2068_v28 = vsel %vm5359_vm7, %v4633_v44, %v2067_v45  ;;  %v399_v29 = vld [vmem:[#allocation3 + $0x378] sm:$0xff] }
  0x76   : > { %v4469_v54 = vcombine.low %v383_v38, %v391_v39  ;;  %v4486_v56 = vcombine.high %v399_v29, %v407_v32  ;;  %v4485_v62 = vcombine.low %v399_v29, %v407_v32  ;;  %v335_v39 = vld [vmem:[#allocation3 + $0x180] sm:$0xff]  ;;  %v289_v32 = vld [vmem:[#allocation3 + $0x10] sm:$0xff] }
  0x77   : > { %v4585_v44 = vcombine.high %v335_v39, %v343_v40 }
  0x78   : > { %974 = vmatpush1.bf16.msra.mxu0 %v844_v49  ;;  %1017 = vmatpush1.bf16.msra.mxu1 %v850_v52  ;;  %v398_v49 = vld [vmem:[#allocation3 + $0x370] sm:$0xff]  ;;  %v2064_v52 = vsel %vm5359_vm7, %v4632_v41, %v2063_v43  ;;  %v336_v41 = vld [vmem:[#allocation3 + $0x188] sm:$0xff] }
  0x79   : > { %1051 = vmatprep.subr.bf16.mxu0 %v4448_v50  ;;  %1094 = vmatprep.subr.bf16.mxu1 %v4450_v53  ;;  %v406_v50 = vld [vmem:[#allocation3 + $0x3b0] sm:$0xff]  ;;  %v5373_v33 = vcombine.low %v2064_v52, %v2068_v28  ;;  %v4467_v53 = vcombine.low %v382_v36, %v390_v37 }
  0x7a   : > { %v4484_v55 = vcombine.high %v398_v49, %v406_v50 }
  0x7b   : > { %4524 = vmatmul.mubr.msk.bf16.vlgmr.msra.gmra.mrb[4].mxu0 %vm826_vm4, %v5333_v10  ;;  %4526 = vmatmul.mubr.msk.bf16.vlgmr.msra.gmra.mrb[4].mxu1 %vm826_vm4, %v5333_v10 }
  0x7c   : > { %1052 = vmatpush1.bf16.msra.mxu0 %v4447_v58  ;;  %1095 = vmatpush1.bf16.msra.mxu1 %v4449_v59  ;;  %v422_v58 = vld [vmem:[#allocation3 + $0x430] sm:$0xff]  ;;  %v415_v59 = vld [vmem:[#allocation3 + $0x3f8] sm:$0xff] }
  0x7d   : > { %1053 = vmatprep.subr.bf16.mxu0 %v4464_v60  ;;  %1096 = vmatprep.subr.bf16.mxu1 %v4466_v61  ;;  %v423_v60 = vld [vmem:[#allocation3 + $0x438] sm:$0xff]  ;;  %v4483_v61 = vcombine.low %v398_v49, %v406_v50  ;;  %v4500_v63 = vcombine.high %v414_v57, %v422_v58 }
  0x7e   : > { %1083 = vmatprep.mubr.bf16.mxu0 %v5159_v9  ;;  %1126 = vmatprep.mubr.bf16.mxu1 %v5159_v9  ;;  %v4502_v0 = vcombine.high %v415_v59, %v423_v60 }
  0x80   : > { %1054 = vmatpush1.bf16.msra.mxu0 %v4463_v2  ;;  %1097 = vmatpush1.bf16.msra.mxu1 %v4465_v3  ;;  %v431_v2 = vld [vmem:[#allocation3 + $0x478] sm:$0xff]  ;;  %v4499_v3 = vcombine.low %v414_v57, %v422_v58 }
  0x81   : > { %1055 = vmatprep.subr.bf16.mxu0 %v4480_v4  ;;  %1098 = vmatprep.subr.bf16.mxu1 %v4482_v5  ;;  %v4501_v4 = vcombine.low %v415_v59, %v423_v60  ;;  %v4516_v5 = vcombine.high %v430_v1, %v430_v1  ;;  %v4518_v7 = vcombine.high %v431_v2, %v431_v2  ;;  %v305_v60 = vld [vmem:[#allocation3 + $0x90] sm:$0xff] }
  0x82   : > { %v4517_v8 = vcombine.low %v431_v2, %v431_v2 }
  0x84   : > { %1056 = vmatpush1.bf16.msra.mxu0 %v4479_v12  ;;  %1099 = vmatpush1.bf16.msra.mxu1 %v4481_v13  ;;  %v295_v12 = vld [vmem:[#allocation3 + $0x40] sm:$0xff]  ;;  %v288_v13 = vld [vmem:[#allocation3 + $0x8] sm:$0xff]  ;;  %v874_v17 = vsel %vm830_vm2, %v4517_v8, 0 }
  0x85   : > { %1057 = vmatprep.subr.bf16.mxu0 %v4496_v14  ;;  %1100 = vmatprep.subr.bf16.mxu1 %v4498_v15  ;;  %v296_v14 = vld [vmem:[#allocation3 + $0x48] sm:$0xff]  ;;  %v868_v15 = vsel %vm830_vm2, %v4515_v6, 0  ;;  %v4537_v16 = vcombine.high %v287_v11, %v295_v12  ;;  %v4536_v23 = vcombine.low %v287_v11, %v295_v12  ;;  %v322_v6 = vld [vmem:[#allocation3 + $0x118] sm:$0xff] }
  0x86   : > { %v4538_v24 = vcombine.low %v288_v13, %v296_v14 }
  0x88   : > { %1058 = vmatpush1.bf16.msra.mxu0 %v4495_v18  ;;  %1101 = vmatpush1.bf16.msra.mxu1 %v4497_v19  ;;  %v4539_v18 = vcombine.high %v288_v13, %v296_v14  ;;  %v303_v19 = vld [vmem:[#allocation3 + $0x80] sm:$0xff]  ;;  %v337_v14 = vld [vmem:[#allocation3 + $0x190] sm:$0xff] }
  0x89   : > { %4527 = vmatprep.subr.msk.bf16.mxu0 %vm830_vm2, %v4512_v20  ;;  %4529 = vmatprep.subr.msk.bf16.mxu1 %vm830_vm2, %v4514_v22  ;;  %v311_v20 = vld [vmem:[#allocation3 + $0xc0] sm:$0xff]  ;;  %v312_v22 = vld [vmem:[#allocation3 + $0xc8] sm:$0xff] }
  0x8a   : > { %v4553_v25 = vcombine.high %v303_v19, %v311_v20  ;;  %v4555_v26 = vcombine.high %v304_v21, %v312_v22  ;;  %v4554_v36 = vcombine.low %v304_v21, %v312_v22  ;;  %v353_v22 = vld [vmem:[#allocation3 + $0x210] sm:$0xff] }
  0x8c   : > { %1060 = vmatpush1.bf16.msra.mxu0 %v856_v30  ;;  %1103 = vmatpush1.bf16.msra.mxu1 %v862_v34  ;;  %v327_v30 = vld [vmem:[#allocation3 + $0x140] sm:$0xff]  ;;  %v328_v34 = vld [vmem:[#allocation3 + $0x148] sm:$0xff] }
  0x8d   : > { %1137 = vmatprep.subr.bf16.mxu0 %v4452_v31  ;;  %1180 = vmatprep.subr.bf16.mxu1 %v4454_v35  ;;  %v320_v31 = vld [vmem:[#allocation3 + $0x108] sm:$0xff]  ;;  %v4552_v35 = vcombine.low %v303_v19, %v311_v20  ;;  %v4569_v37 = vcombine.high %v319_v27, %v327_v30  ;;  %v4568_v43 = vcombine.low %v319_v27, %v327_v30 }
  0x8e   : > { %v4571_v38 = vcombine.high %v320_v31, %v328_v34  ;;  %v4604_v27 = vcombine.low %v353_v22, %v353_v22 }
  0x8f   : > { %4528 = vmatmul.mubr.msk.bf16.vlgmr.msra.gmra.mrb[8].mxu0 %vm826_vm4, %v5333_v10  ;;  %4530 = vmatmul.mubr.msk.bf16.vlgmr.msra.gmra.mrb[8].mxu1 %vm826_vm4, %v5333_v10 }
  0x90   : > { %1138 = vmatpush1.bf16.msra.mxu0 %v4451_v42  ;;  %1181 = vmatpush1.bf16.msra.mxu1 %v4453_v46  ;;  %v344_v42 = vld [vmem:[#allocation3 + $0x1c8] sm:$0xff]  ;;  %v351_v46 = vld [vmem:[#allocation3 + $0x200] sm:$0xff] }
  0x91   : > { %1139 = vmatprep.subr.bf16.mxu0 %v4468_v47  ;;  %1182 = vmatprep.subr.bf16.mxu1 %v4470_v48  ;;  %v4587_v45 = vcombine.high %v336_v41, %v344_v42  ;;  %v352_v47 = vld [vmem:[#allocation3 + $0x208] sm:$0xff]  ;;  %v4584_v48 = vcombine.low %v335_v39, %v343_v40  ;;  %v4586_v49 = vcombine.low %v336_v41, %v344_v42  ;;  %v307_v42 = vld [vmem:[#allocation3 + $0xa0] sm:$0xff] }
  0x92   : > { %1169 = vmatprep.mubr.bf16.mxu0 %v5159_v9  ;;  %1212 = vmatprep.mubr.bf16.mxu1 %v5159_v9  ;;  %v4601_v50 = vcombine.high %v351_v46, %v351_v46  ;;  %v4600_v52 = vcombine.low %v351_v46, %v351_v46  ;;  %v4603_v28 = vcombine.high %v352_v47, %v352_v47 }
  0x93   : > { %v4602_v29 = vcombine.low %v352_v47, %v352_v47 }
  0x94   : > { %1140 = vmatpush1.bf16.msra.mxu0 %v4467_v53  ;;  %1183 = vmatpush1.bf16.msra.mxu1 %v4469_v54  ;;  %v297_v53 = vld [vmem:[#allocation3 + $0x50] sm:$0xff]  ;;  %v290_v54 = vld [vmem:[#allocation3 + $0x18] sm:$0xff] }
  0x95   : > { %1141 = vmatprep.subr.bf16.mxu0 %v4484_v55  ;;  %1184 = vmatprep.subr.bf16.mxu1 %v4486_v56  ;;  %v298_v55 = vld [vmem:[#allocation3 + $0x58] sm:$0xff]  ;;  %v1592_v56 = vsel %vm830_vm2, %v4600_v52, 0  ;;  %v4541_v57 = vcombine.high %v289_v32, %v297_v53  ;;  %v1598_v58 = vsel %vm830_vm2, %v4602_v29, 0  ;;  %v324_v52 = vld [vmem:[#allocation3 + $0x128] sm:$0xff] }
  0x96   : > { %v4543_v59 = vcombine.high %v290_v54, %v298_v55  ;;  %v4542_v1 = vcombine.low %v290_v54, %v298_v55  ;;  %v339_v55 = vld [vmem:[#allocation3 + $0x1a0] sm:$0xff] }
  0x98   : > { %1142 = vmatpush1.bf16.msra.mxu0 %v4483_v61  ;;  %1185 = vmatpush1.bf16.msra.mxu1 %v4485_v62  ;;  %v313_v61 = vld [vmem:[#allocation3 + $0xd0] sm:$0xff]  ;;  %v306_v62 = vld [vmem:[#allocation3 + $0x98] sm:$0xff] }
  0x99   : > { %1143 = vmatprep.subr.bf16.mxu0 %v4500_v63  ;;  %1186 = vmatprep.subr.bf16.mxu1 %v4502_v0  ;;  %v314_v63 = vld [vmem:[#allocation3 + $0xd8] sm:$0xff]  ;;  %v4540_v0 = vcombine.low %v289_v32, %v297_v53  ;;  %v4557_v2 = vcombine.high %v305_v60, %v313_v61  ;;  %v4556_v8 = vcombine.low %v305_v60, %v313_v61 }
  0x9a   : > { %v4558_v11 = vcombine.low %v306_v62, %v314_v63 }
  0x9c   : > { %1144 = vmatpush1.bf16.msra.mxu0 %v4499_v3  ;;  %1187 = vmatpush1.bf16.msra.mxu1 %v4501_v4  ;;  %v4559_v3 = vcombine.high %v306_v62, %v314_v63  ;;  %v321_v4 = vld [vmem:[#allocation3 + $0x110] sm:$0xff]  ;;  %v355_v63 = vld [vmem:[#allocation3 + $0x220] sm:$0xff] }
  0x9d   : > { %4531 = vmatprep.subr.msk.bf16.mxu0 %vm830_vm2, %v4516_v5  ;;  %4533 = vmatprep.subr.msk.bf16.mxu1 %vm830_vm2, %v4518_v7  ;;  %v329_v5 = vld [vmem:[#allocation3 + $0x150] sm:$0xff]  ;;  %v330_v7 = vld [vmem:[#allocation3 + $0x158] sm:$0xff] }
  0x9e   : > { %v4573_v12 = vcombine.high %v321_v4, %v329_v5  ;;  %v4575_v13 = vcombine.high %v322_v6, %v330_v7  ;;  %v4574_v19 = vcombine.low %v322_v6, %v330_v7  ;;  %v293_v7 = vld [vmem:[#allocation3 + $0x30] sm:$0xff] }
  0xa0   : > { %1146 = vmatpush1.bf16.msra.mxu0 %v868_v15  ;;  %1189 = vmatpush1.bf16.msra.mxu1 %v874_v17  ;;  %v345_v15 = vld [vmem:[#allocation3 + $0x1d0] sm:$0xff]  ;;  %v346_v17 = vld [vmem:[#allocation3 + $0x1d8] sm:$0xff] }
  0xa1   : > { %1639 = vmatprep.subr.bf16.mxu0 %v4537_v16  ;;  %1682 = vmatprep.subr.bf16.mxu1 %v4539_v18  ;;  %v338_v16 = vld [vmem:[#allocation3 + $0x198] sm:$0xff]  ;;  %v4572_v18 = vcombine.low %v321_v4, %v329_v5  ;;  %v4589_v20 = vcombine.high %v337_v14, %v345_v15  ;;  %v4608_v4 = vcombine.low %v355_v63, %v355_v63 }
  0xa2   : > { %v4591_v21 = vcombine.high %v338_v16, %v346_v17 }
  0xa3   : > { %4532 = vmatmul.mubr.msk.bf16.vlgmr.msra.gmra.mrb[12].mxu0 %vm826_vm4, %v5333_v10  ;;  %4534 = vmatmul.mubr.msk.bf16.vlgmr.msra.gmra.mrb[12].mxu1 %vm826_vm4, %v5333_v10  ;;  %v4570_v10 = vcombine.low %v320_v31, %v328_v34  ;;  %v291_v34 = vld [vmem:[#allocation3 + $0x20] sm:$0xff] }
  0xa4   : > { %1640 = vmatpush1.bf16.msra.mxu0 %v4536_v23  ;;  %1683 = vmatpush1.bf16.msra.mxu1 %v4538_v24  ;;  %v354_v23 = vld [vmem:[#allocation3 + $0x218] sm:$0xff]  ;;  %v4588_v24 = vcombine.low %v337_v14, %v345_v15 }
  0xa5   : > { %1641 = vmatprep.subr.bf16.mxu0 %v4553_v25  ;;  %1684 = vmatprep.subr.bf16.mxu1 %v4555_v26  ;;  %v4590_v25 = vcombine.low %v338_v16, %v346_v17  ;;  %v4605_v26 = vcombine.high %v353_v22, %v353_v22  ;;  %v4607_v30 = vcombine.high %v354_v23, %v354_v23  ;;  %v309_v17 = vld [vmem:[#allocation3 + $0xb0] sm:$0xff] }
  0xa6   : > { %1671 = vmatprep.mubr.bf16.mxu0 %v5159_v9  ;;  %1714 = vmatprep.mubr.bf16.mxu1 %v5159_v9  ;;  %v4606_v31 = vcombine.low %v354_v23, %v354_v23 }
  0xa8   : > { %1642 = vmatpush1.bf16.msra.mxu0 %v4552_v35  ;;  %1685 = vmatpush1.bf16.msra.mxu1 %v4554_v36  ;;  %v299_v35 = vld [vmem:[#allocation3 + $0x60] sm:$0xff]  ;;  %v292_v36 = vld [vmem:[#allocation3 + $0x28] sm:$0xff]  ;;  %v1610_v40 = vsel %vm830_vm2, %v4606_v31, 0 }
  0xa9   : > { %1643 = vmatprep.subr.bf16.mxu0 %v4569_v37  ;;  %1686 = vmatprep.subr.bf16.mxu1 %v4571_v38  ;;  %v300_v37 = vld [vmem:[#allocation3 + $0x68] sm:$0xff]  ;;  %v1604_v38 = vsel %vm830_vm2, %v4604_v27, 0  ;;  %v4545_v39 = vcombine.high %v291_v34, %v299_v35  ;;  %v326_v27 = vld [vmem:[#allocation3 + $0x138] sm:$0xff] }
  0xaa   : > { %v4547_v41 = vcombine.high %v292_v36, %v300_v37  ;;  %v4546_v46 = vcombine.low %v292_v36, %v300_v37  ;;  %v341_v37 = vld [vmem:[#allocation3 + $0x1b0] sm:$0xff] }
  0xac   : > { %1644 = vmatpush1.bf16.msra.mxu0 %v4568_v43  ;;  %1687 = vmatpush1.bf16.msra.mxu1 %v4570_v10  ;;  %v315_v43 = vld [vmem:[#allocation3 + $0xe0] sm:$0xff]  ;;  %v308_v10 = vld [vmem:[#allocation3 + $0xa8] sm:$0xff] }
  0xad   : > { %1645 = vmatprep.subr.bf16.mxu0 %v4585_v44  ;;  %1688 = vmatprep.subr.bf16.mxu1 %v4587_v45  ;;  %v316_v44 = vld [vmem:[#allocation3 + $0xe8] sm:$0xff]  ;;  %v4544_v45 = vcombine.low %v291_v34, %v299_v35  ;;  %v4561_v47 = vcombine.high %v307_v42, %v315_v43  ;;  %v4560_v29 = vcombine.low %v307_v42, %v315_v43 }
  0xae   : > { %v4562_v32 = vcombine.low %v308_v10, %v316_v44 }
  0xb0   : > { %1646 = vmatpush1.bf16.msra.mxu0 %v4584_v48  ;;  %1689 = vmatpush1.bf16.msra.mxu1 %v4586_v49  ;;  %v4563_v48 = vcombine.high %v308_v10, %v316_v44  ;;  %v323_v49 = vld [vmem:[#allocation3 + $0x120] sm:$0xff]  ;;  %v357_v44 = vld [vmem:[#allocation3 + $0x230] sm:$0xff] }
  0xb1   : > { %4616 = vmatprep.subr.msk.bf16.mxu0 %vm830_vm2, %v4601_v50  ;;  %4618 = vmatprep.subr.msk.bf16.mxu1 %vm830_vm2, %v4603_v28  ;;  %v331_v50 = vld [vmem:[#allocation3 + $0x160] sm:$0xff]  ;;  %v332_v28 = vld [vmem:[#allocation3 + $0x168] sm:$0xff] }
  0xb2   : > { %v4577_v53 = vcombine.high %v323_v49, %v331_v50  ;;  %v4579_v54 = vcombine.high %v324_v52, %v332_v28  ;;  %v4578_v60 = vcombine.low %v324_v52, %v332_v28  ;;  %v1984_v28 = vld [vmem:[#allocation3 + $0x480] sm:$0xff] }
  0xb4   : > { %1648 = vmatpush1.bf16.msra.mxu0 %v1592_v56  ;;  %1691 = vmatpush1.bf16.msra.mxu1 %v1598_v58  ;;  %v347_v56 = vld [vmem:[#allocation3 + $0x1e0] sm:$0xff]  ;;  %v348_v58 = vld [vmem:[#allocation3 + $0x1e8] sm:$0xff] }
  0xb5   : > { %1725 = vmatprep.subr.bf16.mxu0 %v4541_v57  ;;  %1768 = vmatprep.subr.bf16.mxu1 %v4543_v59  ;;  %v340_v57 = vld [vmem:[#allocation3 + $0x1a8] sm:$0xff]  ;;  %v4576_v59 = vcombine.low %v323_v49, %v331_v50  ;;  %v4593_v61 = vcombine.high %v339_v55, %v347_v56  ;;  %v4612_v49 = vcombine.low %v357_v44, %v357_v44 }
  0xb6   : > { %v4595_v62 = vcombine.high %v340_v57, %v348_v58 }
  0xb7   : > { %4617 = vmatmul.mubr.msk.bf16.vlgmr.msra.gmra.mrb[0].mxu0 %vm826_vm4, %v5345_v51  ;;  %4619 = vmatmul.mubr.msk.bf16.vlgmr.msra.gmra.mrb[0].mxu1 %vm826_vm4, %v5345_v51 }
  0xb8   : > { %1726 = vmatpush1.bf16.msra.mxu0 %v4540_v0  ;;  %1769 = vmatpush1.bf16.msra.mxu1 %v4542_v1  ;;  %v356_v0 = vld [vmem:[#allocation3 + $0x228] sm:$0xff]  ;;  %v4592_v1 = vcombine.low %v339_v55, %v347_v56 }
  0xb9   : > { %1727 = vmatprep.subr.bf16.mxu0 %v4557_v2  ;;  %1770 = vmatprep.subr.bf16.mxu1 %v4559_v3  ;;  %v4594_v2 = vcombine.low %v340_v57, %v348_v58  ;;  %v4609_v3 = vcombine.high %v355_v63, %v355_v63  ;;  %v4611_v5 = vcombine.high %v356_v0, %v356_v0  ;;  %v2000_v58 = vld [vmem:[#allocation3 + $0x500] sm:$0xff] }
  0xba   : > { %1757 = vmatprep.mubr.bf16.mxu0 %v5159_v9  ;;  %1800 = vmatprep.mubr.bf16.mxu1 %v5159_v9  ;;  %v4610_v6 = vcombine.low %v356_v0, %v356_v0 }
  0xbc   : > { %1728 = vmatpush1.bf16.msra.mxu0 %v4556_v8  ;;  %1771 = vmatpush1.bf16.msra.mxu1 %v4558_v11  ;;  %v301_v8 = vld [vmem:[#allocation3 + $0x70] sm:$0xff]  ;;  %v294_v11 = vld [vmem:[#allocation3 + $0x38] sm:$0xff]  ;;  %v1622_v15 = vsel %vm830_vm2, %v4610_v6, 0 }
  0xbd   : > { %1729 = vmatprep.subr.bf16.mxu0 %v4573_v12  ;;  %1772 = vmatprep.subr.bf16.mxu1 %v4575_v13  ;;  %v302_v12 = vld [vmem:[#allocation3 + $0x78] sm:$0xff]  ;;  %v1616_v13 = vsel %vm830_vm2, %v4608_v4, 0  ;;  %v4549_v14 = vcombine.high %v293_v7, %v301_v8  ;;  %v2017_v4 = vld [vmem:[#allocation3 + $0x588] sm:$0xff] }
  0xbe   : > { %v4551_v16 = vcombine.high %v294_v11, %v302_v12  ;;  %v4550_v22 = vcombine.low %v294_v11, %v302_v12  ;;  %v2032_v12 = vld [vmem:[#allocation3 + $0x600] sm:$0xff] }
  0xc0   : > { %1730 = vmatpush1.bf16.msra.mxu0 %v4572_v18  ;;  %1773 = vmatpush1.bf16.msra.mxu1 %v4574_v19  ;;  %v317_v18 = vld [vmem:[#allocation3 + $0xf0] sm:$0xff]  ;;  %v310_v19 = vld [vmem:[#allocation3 + $0xb8] sm:$0xff] }
  0xc1   : > { %1731 = vmatprep.subr.bf16.mxu0 %v4589_v20  ;;  %1774 = vmatprep.subr.bf16.mxu1 %v4591_v21  ;;  %v318_v20 = vld [vmem:[#allocation3 + $0xf8] sm:$0xff]  ;;  %v4548_v21 = vcombine.low %v293_v7, %v301_v8  ;;  %v4565_v23 = vcombine.high %v309_v17, %v317_v18  ;;  %v4564_v31 = vcombine.low %v309_v17, %v317_v18 }
  0xc2   : > { %v4566_v34 = vcombine.low %v310_v19, %v318_v20 }
  0xc4   : > { %1732 = vmatpush1.bf16.msra.mxu0 %v4588_v24  ;;  %1775 = vmatpush1.bf16.msra.mxu1 %v4590_v25  ;;  %v4567_v24 = vcombine.high %v310_v19, %v318_v20  ;;  %v325_v25 = vld [vmem:[#allocation3 + $0x130] sm:$0xff]  ;;  %v2048_v19 = vld [vmem:[#allocation3 + $0x680] sm:$0xff]  ;;  %v2049_v20 = vld [vmem:[#allocation3 + $0x688] sm:$0xff] }
  0xc5   : > { %4620 = vmatprep.subr.msk.bf16.mxu0 %vm830_vm2, %v4605_v26  ;;  %4622 = vmatprep.subr.msk.bf16.mxu1 %vm830_vm2, %v4607_v30  ;;  %v333_v26 = vld [vmem:[#allocation3 + $0x170] sm:$0xff]  ;;  %v334_v30 = vld [vmem:[#allocation3 + $0x178] sm:$0xff] }
  0xc6   : > { %v4581_v35 = vcombine.high %v325_v25, %v333_v26  ;;  %v4583_v36 = vcombine.high %v326_v27, %v334_v30  ;;  %v4582_v42 = vcombine.low %v326_v27, %v334_v30  ;;  %v1986_v27 = vld [vmem:[#allocation3 + $0x490] sm:$0xff] }
  0xc7   : > { %v1994_v30 = vld [vmem:[#allocation3 + $0x4d0] sm:$0xff] }
  0xc8   : > { %1734 = vmatpush1.bf16.msra.mxu0 %v1604_v38  ;;  %1777 = vmatpush1.bf16.msra.mxu1 %v1610_v40  ;;  %v349_v38 = vld [vmem:[#allocation3 + $0x1f0] sm:$0xff]  ;;  %v350_v40 = vld [vmem:[#allocation3 + $0x1f8] sm:$0xff] }
  0xc9   : > { %1811 = vmatprep.subr.bf16.mxu0 %v4545_v39  ;;  %1854 = vmatprep.subr.bf16.mxu1 %v4547_v41  ;;  %v342_v39 = vld [vmem:[#allocation3 + $0x1b8] sm:$0xff]  ;;  %v4580_v41 = vcombine.low %v325_v25, %v333_v26  ;;  %v4597_v43 = vcombine.high %v341_v37, %v349_v38  ;;  %v4702_v25 = vcombine.high %v2049_v20, %v2049_v20 }
  0xca   : > { %v4599_v10 = vcombine.high %v342_v39, %v350_v40  ;;  %v4701_v26 = vcombine.low %v2049_v20, %v2049_v20 }
  0xcb   : > { %4621 = vmatmul.mubr.msk.bf16.vlgmr.msra.gmra.mrb[4].mxu0 %vm826_vm4, %v5345_v51  ;;  %4623 = vmatmul.mubr.msk.bf16.vlgmr.msra.gmra.mrb[4].mxu1 %vm826_vm4, %v5345_v51 }
  0xcc   : > { %1812 = vmatpush1.bf16.msra.mxu0 %v4544_v45  ;;  %1855 = vmatpush1.bf16.msra.mxu1 %v4546_v46  ;;  %v358_v45 = vld [vmem:[#allocation3 + $0x238] sm:$0xff]  ;;  %v4596_v46 = vcombine.low %v341_v37, %v349_v38  ;;  %v2442_v37 = vsel %vm830_vm2, %v4701_v26, 0 }
  0xcd   : > { %1813 = vmatprep.subr.bf16.mxu0 %v4561_v47  ;;  %1856 = vmatprep.subr.bf16.mxu1 %v4563_v48  ;;  %v4598_v47 = vcombine.low %v342_v39, %v350_v40  ;;  %v4613_v48 = vcombine.high %v357_v44, %v357_v44  ;;  %v4615_v50 = vcombine.high %v358_v45, %v358_v45  ;;  %v2002_v39 = vld [vmem:[#allocation3 + $0x510] sm:$0xff] }
  0xce   : > { %1843 = vmatprep.mubr.bf16.mxu0 %v5159_v9  ;;  %1886 = vmatprep.mubr.bf16.mxu1 %v5159_v9  ;;  %v4614_v52 = vcombine.low %v358_v45, %v358_v45  ;;  %v2010_v40 = vld [vmem:[#allocation3 + $0x550] sm:$0xff] }
  0xcf   : > { %v4656_v44 = vcombine.high %v2002_v39, %v2010_v40 }
  0xd0   : > { %1814 = vmatpush1.bf16.msra.mxu0 %v4560_v29  ;;  %1857 = vmatpush1.bf16.msra.mxu1 %v4562_v32  ;;  %v1992_v29 = vld [vmem:[#allocation3 + $0x4c0] sm:$0xff]  ;;  %v1985_v32 = vld [vmem:[#allocation3 + $0x488] sm:$0xff]  ;;  %v1634_v56 = vsel %vm830_vm2, %v4614_v52, 0 }
  0xd1   : > { %1815 = vmatprep.subr.bf16.mxu0 %v4577_v53  ;;  %1858 = vmatprep.subr.bf16.mxu1 %v4579_v54  ;;  %v1993_v53 = vld [vmem:[#allocation3 + $0x4c8] sm:$0xff]  ;;  %v1628_v54 = vsel %vm830_vm2, %v4612_v49, 0  ;;  %v4636_v55 = vcombine.high %v1984_v28, %v1992_v29  ;;  %v2027_v49 = vld [vmem:[#allocation3 + $0x5d8] sm:$0xff] }
  0xd2   : > { %v4638_v57 = vcombine.high %v1985_v32, %v1993_v53  ;;  %v4637_v63 = vcombine.low %v1985_v32, %v1993_v53  ;;  %v2034_v32 = vld [vmem:[#allocation3 + $0x610] sm:$0xff] }
  0xd3   : > { %v2042_v53 = vld [vmem:[#allocation3 + $0x650] sm:$0xff] }
  0xd4   : > { %1816 = vmatpush1.bf16.msra.mxu0 %v4576_v59  ;;  %1859 = vmatpush1.bf16.msra.mxu1 %v4578_v60  ;;  %v2008_v59 = vld [vmem:[#allocation3 + $0x540] sm:$0xff]  ;;  %v2001_v60 = vld [vmem:[#allocation3 + $0x508] sm:$0xff] }
  0xd5   : > { %1817 = vmatprep.subr.bf16.mxu0 %v4593_v61  ;;  %1860 = vmatprep.subr.bf16.mxu1 %v4595_v62  ;;  %v2009_v61 = vld [vmem:[#allocation3 + $0x548] sm:$0xff]  ;;  %v4635_v62 = vcombine.low %v1984_v28, %v1992_v29  ;;  %v4652_v0 = vcombine.high %v2000_v58, %v2008_v59  ;;  %v4651_v6 = vcombine.low %v2000_v58, %v2008_v59 }
  0xd6   : > { %v4653_v7 = vcombine.low %v2001_v60, %v2009_v61  ;;  %v4688_v58 = vcombine.high %v2034_v32, %v2042_v53 }
  0xd8   : > { %1818 = vmatpush1.bf16.msra.mxu0 %v4592_v1  ;;  %1861 = vmatpush1.bf16.msra.mxu1 %v4594_v2  ;;  %v4654_v1 = vcombine.high %v2001_v60, %v2009_v61  ;;  %v2016_v2 = vld [vmem:[#allocation3 + $0x580] sm:$0xff]  ;;  %v2050_v60 = vld [vmem:[#allocation3 + $0x690] sm:$0xff]  ;;  %v2051_v61 = vld [vmem:[#allocation3 + $0x698] sm:$0xff] }
  0xd9   : > { %4624 = vmatprep.subr.msk.bf16.mxu0 %vm830_vm2, %v4609_v3  ;;  %4626 = vmatprep.subr.msk.bf16.mxu1 %vm830_vm2, %v4611_v5  ;;  %v2024_v3 = vld [vmem:[#allocation3 + $0x5c0] sm:$0xff]  ;;  %v2025_v5 = vld [vmem:[#allocation3 + $0x5c8] sm:$0xff] }
  0xda   : > { %v4668_v8 = vcombine.high %v2016_v2, %v2024_v3  ;;  %v4670_v11 = vcombine.high %v2017_v4, %v2025_v5 }
  0xdc   : > { %1820 = vmatpush1.bf16.msra.mxu0 %v1616_v13  ;;  %1863 = vmatpush1.bf16.msra.mxu1 %v1622_v15  ;;  %v2040_v13 = vld [vmem:[#allocation3 + $0x640] sm:$0xff]  ;;  %v2041_v15 = vld [vmem:[#allocation3 + $0x648] sm:$0xff] }
  0xdd   : > { %1897 = vmatprep.subr.bf16.mxu0 %v4549_v14  ;;  %1940 = vmatprep.subr.bf16.mxu1 %v4551_v16  ;;  %v2033_v14 = vld [vmem:[#allocation3 + $0x608] sm:$0xff]  ;;  %v4667_v16 = vcombine.low %v2016_v2, %v2024_v3  ;;  %v4684_v17 = vcombine.high %v2032_v12, %v2040_v13  ;;  %v4706_v2 = vcombine.high %v2051_v61, %v2051_v61 }
  0xde   : > { %v4686_v18 = vcombine.high %v2033_v14, %v2041_v15  ;;  %v4705_v3 = vcombine.low %v2051_v61, %v2051_v61 }
  0xdf   : > { %4625 = vmatmul.mubr.msk.bf16.vlgmr.msra.gmra.mrb[8].mxu0 %vm826_vm4, %v5345_v51  ;;  %4627 = vmatmul.mubr.msk.bf16.vlgmr.msra.gmra.mrb[8].mxu1 %vm826_vm4, %v5345_v51 }
  0xe0   : > { %1898 = vmatpush1.bf16.msra.mxu0 %v4548_v21  ;;  %1941 = vmatpush1.bf16.msra.mxu1 %v4550_v22  ;;  %v4683_v21 = vcombine.low %v2032_v12, %v2040_v13  ;;  %v4685_v22 = vcombine.low %v2033_v14, %v2041_v15  ;;  %v2454_v12 = vsel %vm830_vm2, %v4705_v3, 0  ;;  %v2004_v14 = vld [vmem:[#allocation3 + $0x520] sm:$0xff] }
  0xe1   : > { %1899 = vmatprep.subr.bf16.mxu0 %v4565_v23  ;;  %1942 = vmatprep.subr.bf16.mxu1 %v4567_v24  ;;  %v4700_v23 = vcombine.high %v2048_v19, %v2048_v19  ;;  %v4699_v24 = vcombine.low %v2048_v19, %v2048_v19  ;;  %v2012_v15 = vld [vmem:[#allocation3 + $0x560] sm:$0xff] }
  0xe2   : > { %1929 = vmatprep.mubr.bf16.mxu0 %v5159_v9  ;;  %1972 = vmatprep.mubr.bf16.mxu1 %v5159_v9  ;;  %v4660_v19 = vcombine.high %v2004_v14, %v2012_v15 }
  0xe4   : > { %1900 = vmatpush1.bf16.msra.mxu0 %v4564_v31  ;;  %1943 = vmatpush1.bf16.msra.mxu1 %v4566_v34  ;;  %v1987_v31 = vld [vmem:[#allocation3 + $0x498] sm:$0xff] }
  0xe5   : > { %1901 = vmatprep.subr.bf16.mxu0 %v4581_v35  ;;  %1944 = vmatprep.subr.bf16.mxu1 %v4583_v36  ;;  %v1995_v34 = vld [vmem:[#allocation3 + $0x4d8] sm:$0xff]  ;;  %v2436_v35 = vsel %vm830_vm2, %v4699_v24, 0  ;;  %v4640_v36 = vcombine.high %v1986_v27, %v1994_v30  ;;  %v2029_v24 = vld [vmem:[#allocation3 + $0x5e8] sm:$0xff] }
  0xe6   : > { %v4642_v38 = vcombine.high %v1987_v31, %v1995_v34 }
  0xe8   : > { %1902 = vmatpush1.bf16.msra.mxu0 %v4580_v41  ;;  %1945 = vmatpush1.bf16.msra.mxu1 %v4582_v42  ;;  %v2003_v41 = vld [vmem:[#allocation3 + $0x518] sm:$0xff] }
  0xe9   : > { %1903 = vmatprep.subr.bf16.mxu0 %v4597_v43  ;;  %1946 = vmatprep.subr.bf16.mxu1 %v4599_v10  ;;  %v2011_v42 = vld [vmem:[#allocation3 + $0x558] sm:$0xff]  ;;  %v4639_v43 = vcombine.low %v1986_v27, %v1994_v30  ;;  %v4641_v10 = vcombine.low %v1987_v31, %v1995_v34  ;;  %v2036_v31 = vld [vmem:[#allocation3 + $0x620] sm:$0xff] }
  0xea   : > { %v4658_v45 = vcombine.high %v2003_v41, %v2011_v42  ;;  %v4657_v52 = vcombine.low %v2003_v41, %v2011_v42  ;;  %v2044_v34 = vld [vmem:[#allocation3 + $0x660] sm:$0xff]  ;;  %v2053_v42 = vld [vmem:[#allocation3 + $0x6a8] sm:$0xff] }
  0xeb   : > { %v2052_v41 = vld [vmem:[#allocation3 + $0x6a0] sm:$0xff] }
  0xec   : > { %1904 = vmatpush1.bf16.msra.mxu0 %v4596_v46  ;;  %1947 = vmatpush1.bf16.msra.mxu1 %v4598_v47  ;;  %v2018_v46 = vld [vmem:[#allocation3 + $0x590] sm:$0xff] }
  0xed   : > { %4628 = vmatprep.subr.msk.bf16.mxu0 %vm830_vm2, %v4613_v48  ;;  %4630 = vmatprep.subr.msk.bf16.mxu1 %vm830_vm2, %v4615_v50  ;;  %v2026_v47 = vld [vmem:[#allocation3 + $0x5d0] sm:$0xff]  ;;  %v2019_v48 = vld [vmem:[#allocation3 + $0x598] sm:$0xff]  ;;  %v4655_v50 = vcombine.low %v2002_v39, %v2010_v40  ;;  %v4692_v39 = vcombine.high %v2036_v31, %v2044_v34 }
  0xee   : > { %v4672_v28 = vcombine.high %v2018_v46, %v2026_v47  ;;  %v4674_v29 = vcombine.high %v2019_v48, %v2027_v49 }
  0xf0   : > { %1906 = vmatpush1.bf16.msra.mxu0 %v1628_v54  ;;  %1949 = vmatpush1.bf16.msra.mxu1 %v1634_v56  ;;  %v2035_v54 = vld [vmem:[#allocation3 + $0x618] sm:$0xff]  ;;  %v4671_v56 = vcombine.low %v2018_v46, %v2026_v47  ;;  %v4710_v46 = vcombine.high %v2053_v42, %v2053_v42  ;;  %v4709_v47 = vcombine.low %v2053_v42, %v2053_v42 }
  0xf1   : > { %2483 = vmatprep.subr.bf16.mxu0 %v4636_v55  ;;  %2526 = vmatprep.subr.bf16.mxu1 %v4638_v57  ;;  %v2043_v55 = vld [vmem:[#allocation3 + $0x658] sm:$0xff]  ;;  %v4673_v57 = vcombine.low %v2019_v48, %v2027_v49  ;;  %v1990_v48 = vld [vmem:[#allocation3 + $0x4b0] sm:$0xff] }
  0xf2   : > { %v4690_v59 = vcombine.high %v2035_v54, %v2043_v55  ;;  %v1998_v49 = vld [vmem:[#allocation3 + $0x4f0] sm:$0xff] }
  0xf3   : > { %4629 = vmatmul.mubr.msk.bf16.vlgmr.msra.gmra.mrb[12].mxu0 %vm826_vm4, %v5345_v51  ;;  %4631 = vmatmul.mubr.msk.bf16.vlgmr.msra.gmra.mrb[12].mxu1 %vm826_vm4, %v5345_v51  ;;  %v4669_v51 = vcombine.low %v2017_v4, %v2025_v5  ;;  %v1988_v4 = vld [vmem:[#allocation3 + $0x4a0] sm:$0xff] }
  0xf4   : > { %2484 = vmatpush1.bf16.msra.mxu0 %v4635_v62  ;;  %2527 = vmatpush1.bf16.msra.mxu1 %v4637_v63  ;;  %v4687_v62 = vcombine.low %v2034_v32, %v2042_v53  ;;  %v4689_v63 = vcombine.low %v2035_v54, %v2043_v55  ;;  %v1996_v5 = vld [vmem:[#allocation3 + $0x4e0] sm:$0xff]  ;;  %v2466_v32 = vsel %vm830_vm2, %v4709_v47, 0  ;;  %v2006_v54 = vld [vmem:[#allocation3 + $0x530] sm:$0xff] }
  0xf5   : > { %2485 = vmatprep.subr.bf16.mxu0 %v4652_v0  ;;  %2528 = vmatprep.subr.bf16.mxu1 %v4654_v1  ;;  %v4704_v0 = vcombine.high %v2050_v60, %v2050_v60  ;;  %v4703_v1 = vcombine.low %v2050_v60, %v2050_v60  ;;  %v2014_v55 = vld [vmem:[#allocation3 + $0x570] sm:$0xff] }
  0xf6   : > { %2515 = vmatprep.mubr.bf16.mxu0 %v5159_v9  ;;  %2558 = vmatprep.mubr.bf16.mxu1 %v5159_v9  ;;  %v4664_v60 = vcombine.high %v2006_v54, %v2014_v55 }
  0xf8   : > { %2486 = vmatpush1.bf16.msra.mxu0 %v4651_v6  ;;  %2529 = vmatpush1.bf16.msra.mxu1 %v4653_v7  ;;  %v1989_v6 = vld [vmem:[#allocation3 + $0x4a8] sm:$0xff] }
  0xf9   : > { %2487 = vmatprep.subr.bf16.mxu0 %v4668_v8  ;;  %2530 = vmatprep.subr.bf16.mxu1 %v4670_v11  ;;  %v1997_v7 = vld [vmem:[#allocation3 + $0x4e8] sm:$0xff]  ;;  %v2448_v8 = vsel %vm830_vm2, %v4703_v1, 0  ;;  %v4644_v11 = vcombine.high %v1988_v4, %v1996_v5  ;;  %v2031_v1 = vld [vmem:[#allocation3 + $0x5f8] sm:$0xff] }
  0xfa   : > { %v4646_v13 = vcombine.high %v1989_v6, %v1997_v7 }
  0xfc   : > { %2488 = vmatpush1.bf16.msra.mxu0 %v4667_v16  ;;  %2531 = vmatpush1.bf16.msra.mxu1 %v4669_v51  ;;  %v2005_v16 = vld [vmem:[#allocation3 + $0x528] sm:$0xff] }
  0xfd   : > { %2489 = vmatprep.subr.bf16.mxu0 %v4684_v17  ;;  %2532 = vmatprep.subr.bf16.mxu1 %v4686_v18  ;;  %v2013_v51 = vld [vmem:[#allocation3 + $0x568] sm:$0xff]  ;;  %v4643_v17 = vcombine.low %v1988_v4, %v1996_v5  ;;  %v4645_v18 = vcombine.low %v1989_v6, %v1997_v7  ;;  %v2038_v6 = vld [vmem:[#allocation3 + $0x630] sm:$0xff] }
  0xfe   : > { %v4662_v20 = vcombine.high %v2005_v16, %v2013_v51  ;;  %v4661_v26 = vcombine.low %v2005_v16, %v2013_v51  ;;  %v2046_v7 = vld [vmem:[#allocation3 + $0x670] sm:$0xff]  ;;  %v2055_v51 = vld [vmem:[#allocation3 + $0x6b8] sm:$0xff] }
  0xff   : > { %v2054_v16 = vld [vmem:[#allocation3 + $0x6b0] sm:$0xff] }
 0x100   : > { %2490 = vmatpush1.bf16.msra.mxu0 %v4683_v21  ;;  %2533 = vmatpush1.bf16.msra.mxu1 %v4685_v22  ;;  %v2020_v21 = vld [vmem:[#allocation3 + $0x5a0] sm:$0xff] }
 0x101   : > { %4715 = vmatprep.subr.msk.bf16.mxu0 %vm830_vm2, %v4700_v23  ;;  %4717 = vmatprep.subr.msk.bf16.mxu1 %vm830_vm2, %v4702_v25  ;;  %v2028_v22 = vld [vmem:[#allocation3 + $0x5e0] sm:$0xff]  ;;  %v2021_v23 = vld [vmem:[#allocation3 + $0x5a8] sm:$0xff]  ;;  %v4659_v25 = vcombine.low %v2004_v14, %v2012_v15  ;;  %v4696_v14 = vcombine.high %v2038_v6, %v2046_v7 }
 0x102   : > { %v4676_v27 = vcombine.high %v2020_v21, %v2028_v22  ;;  %v4678_v30 = vcombine.high %v2021_v23, %v2029_v24 }
 0x104   : > { %2492 = vmatpush1.bf16.msra.mxu0 %v2436_v35  ;;  %2535 = vmatpush1.bf16.msra.mxu1 %v2442_v37  ;;  %v2037_v35 = vld [vmem:[#allocation3 + $0x628] sm:$0xff]  ;;  %v4675_v37 = vcombine.low %v2020_v21, %v2028_v22  ;;  %v4714_v21 = vcombine.high %v2055_v51, %v2055_v51 }
 0x105   : > { %2569 = vmatprep.subr.bf16.mxu0 %v4640_v36  ;;  %2612 = vmatprep.subr.bf16.mxu1 %v4642_v38  ;;  %v2045_v36 = vld [vmem:[#allocation3 + $0x668] sm:$0xff]  ;;  %v4677_v38 = vcombine.low %v2021_v23, %v2029_v24  ;;  %v2863_v24 = vlaneseq }
 0x106   : > { %v4694_v40 = vcombine.high %v2037_v35, %v2045_v36 }
 0x107   : > { %4716 = vmatmul.mubr.msk.bf16.vlgmr.msra.gmra.mrb[0].mxu0 %vm826_vm4, %v5373_v33  ;;  %4718 = vmatmul.mubr.msk.bf16.vlgmr.msra.gmra.mrb[0].mxu1 %vm826_vm4, %v5373_v33 }
 0x108   : > { %2570 = vmatpush1.bf16.msra.mxu0 %v4639_v43  ;;  %2613 = vmatpush1.bf16.msra.mxu1 %v4641_v10  ;;  %v4691_v43 = vcombine.low %v2036_v31, %v2044_v34  ;;  %v4693_v10 = vcombine.low %v2037_v35, %v2045_v36 }
 0x109   : > { %2571 = vmatprep.subr.bf16.mxu0 %v4656_v44  ;;  %2614 = vmatprep.subr.bf16.mxu1 %v4658_v45  ;;  %v4708_v44 = vcombine.high %v2052_v41, %v2052_v41  ;;  %v4707_v45 = vcombine.low %v2052_v41, %v2052_v41 }
 0x10a   : > { %2601 = vmatprep.mubr.bf16.mxu0 %v5159_v9  ;;  %2644 = vmatprep.mubr.bf16.mxu1 %v5159_v9 }
 0x10c   : > { %2572 = vmatpush1.bf16.msra.mxu0 %v4655_v50  ;;  %2615 = vmatpush1.bf16.msra.mxu1 %v4657_v52  ;;  %v1991_v50 = vld [vmem:[#allocation3 + $0x4b8] sm:$0xff] }
 0x10d   : > { %2573 = vmatprep.subr.bf16.mxu0 %v4672_v28  ;;  %2616 = vmatprep.subr.bf16.mxu1 %v4674_v29  ;;  %v1999_v52 = vld [vmem:[#allocation3 + $0x4f8] sm:$0xff]  ;;  %v2460_v28 = vsel %vm830_vm2, %v4707_v45, 0  ;;  %v4648_v29 = vcombine.high %v1990_v48, %v1998_v49 }
 0x10e   : > { %v4650_v53 = vcombine.high %v1991_v50, %v1999_v52 }
 0x110   : > { %2574 = vmatpush1.bf16.msra.mxu0 %v4671_v56  ;;  %2617 = vmatpush1.bf16.msra.mxu1 %v4673_v57  ;;  %v2007_v56 = vld [vmem:[#allocation3 + $0x538] sm:$0xff] }
 0x111   : > { %2575 = vmatprep.subr.bf16.mxu0 %v4688_v58  ;;  %2618 = vmatprep.subr.bf16.mxu1 %v4690_v59  ;;  %v2015_v57 = vld [vmem:[#allocation3 + $0x578] sm:$0xff]  ;;  %v4647_v58 = vcombine.low %v1990_v48, %v1998_v49  ;;  %v4649_v59 = vcombine.low %v1991_v50, %v1999_v52 }
 0x112   : > { %v4666_v61 = vcombine.high %v2007_v56, %v2015_v57  ;;  %v4665_v3 = vcombine.low %v2007_v56, %v2015_v57 }
 0x114   : > { %2576 = vmatpush1.bf16.msra.mxu0 %v4687_v62  ;;  %2619 = vmatpush1.bf16.msra.mxu1 %v4689_v63  ;;  %v2022_v62 = vld [vmem:[#allocation3 + $0x5b0] sm:$0xff] }
 0x115   : > { %4719 = vmatprep.subr.msk.bf16.mxu0 %vm830_vm2, %v4704_v0  ;;  %4721 = vmatprep.subr.msk.bf16.mxu1 %vm830_vm2, %v4706_v2  ;;  %v2030_v63 = vld [vmem:[#allocation3 + $0x5f0] sm:$0xff]  ;;  %v2023_v0 = vld [vmem:[#allocation3 + $0x5b8] sm:$0xff]  ;;  %v4663_v2 = vcombine.low %v2006_v54, %v2014_v55 }
 0x116   : > { %v4680_v4 = vcombine.high %v2022_v62, %v2030_v63  ;;  %v4682_v5 = vcombine.high %v2023_v0, %v2031_v1 }
 0x118   : > { %2578 = vmatpush1.bf16.msra.mxu0 %v2448_v8  ;;  %2621 = vmatpush1.bf16.msra.mxu1 %v2454_v12  ;;  %v2039_v8 = vld [vmem:[#allocation3 + $0x638] sm:$0xff]  ;;  %v4679_v12 = vcombine.low %v2022_v62, %v2030_v63 }
 0x119   : > { %2655 = vmatprep.subr.bf16.mxu0 %v4644_v11  ;;  %2698 = vmatprep.subr.bf16.mxu1 %v4646_v13  ;;  %v2047_v11 = vld [vmem:[#allocation3 + $0x678] sm:$0xff]  ;;  %v4681_v13 = vcombine.low %v2023_v0, %v2031_v1 }
 0x11a   : > { %v4698_v15 = vcombine.high %v2039_v8, %v2047_v11 }
 0x11b   : > { %4720 = vmatmul.mubr.msk.bf16.vlgmr.msra.gmra.mrb[4].mxu0 %vm826_vm4, %v5373_v33  ;;  %4722 = vmatmul.mubr.msk.bf16.vlgmr.msra.gmra.mrb[4].mxu1 %vm826_vm4, %v5373_v33 }
 0x11c   : > { %2656 = vmatpush1.bf16.msra.mxu0 %v4643_v17  ;;  %2699 = vmatpush1.bf16.msra.mxu1 %v4645_v18  ;;  %v4695_v17 = vcombine.low %v2038_v6, %v2046_v7  ;;  %v4697_v18 = vcombine.low %v2039_v8, %v2047_v11 }
 0x11d   : > { %2657 = vmatprep.subr.bf16.mxu0 %v4660_v19  ;;  %2700 = vmatprep.subr.bf16.mxu1 %v4662_v20  ;;  %v4712_v19 = vcombine.high %v2054_v16, %v2054_v16  ;;  %v4711_v20 = vcombine.low %v2054_v16, %v2054_v16 }
 0x11e   : > { %2687 = vmatprep.mubr.bf16.mxu0 %v5159_v9  ;;  %2730 = vmatprep.mubr.bf16.mxu1 %v5159_v9 }
 0x11f   : > { %v2472_v22 = vsel %vm830_vm2, %v4711_v20, 0 }
 0x120   : > { %2658 = vmatpush1.bf16.msra.mxu0 %v4659_v25  ;;  %2701 = vmatpush1.bf16.msra.mxu1 %v4661_v26  ;;  %v5467_v25 = vshrl.u32 %v2863_v24, 7 }
 0x121   : > { %2659 = vmatprep.subr.bf16.mxu0 %v4676_v27  ;;  %2702 = vmatprep.subr.bf16.mxu1 %v4678_v30  ;;  %v2859_v27 = vld [vmem:[%s5606_s2] sm:$0xff] }
 0x122   : > { %v5470_v26 = vsub.s32 0, %v5467_v25  ;;  %v5476_v30 = vsub.s32 2, %v5467_v25  ;;  %v5479_v31 = vsub.s32 1, %v5467_v25  ;;  %v5482_v34 = vsub.s32 3, %v5467_v25 }
 0x123   : > { %v5489_v1 = vsub.s32 4, %v5467_v25 }
 0x124   : > { %2660 = vmatpush1.bf16.msra.mxu0 %v4675_v37  ;;  %2703 = vmatpush1.bf16.msra.mxu1 %v4677_v38  ;;  %v2874_v35 = vrot.slane %v2859_v27, %v5476_v30  ;;  %v2870_v36 = vrot.slane %v2859_v27, %v5479_v31  ;;  %v2878_v38 = vrot.slane %v2859_v27, %v5482_v34 }
 0x125   : > { %2661 = vmatprep.subr.bf16.mxu0 %v4692_v39  ;;  %2704 = vmatprep.subr.bf16.mxu1 %v4694_v40 }
 0x128   : > { %2662 = vmatpush1.bf16.msra.mxu0 %v4691_v43  ;;  %2705 = vmatpush1.bf16.msra.mxu1 %v4693_v10 }
 0x129   : > { %4723 = vmatprep.subr.msk.bf16.mxu0 %vm830_vm2, %v4708_v44  ;;  %4725 = vmatprep.subr.msk.bf16.mxu1 %vm830_vm2, %v4710_v46 }
 0x12c   : > { %2664 = vmatpush1.bf16.msra.mxu0 %v2460_v28  ;;  %2707 = vmatpush1.bf16.msra.mxu1 %v2466_v32 }
 0x12d   : > { %2741 = vmatprep.subr.bf16.mxu0 %v4648_v29  ;;  %2784 = vmatprep.subr.bf16.mxu1 %v4650_v53 }
 0x12f   : > { %4724 = vmatmul.mubr.msk.bf16.vlgmr.msra.gmra.mrb[8].mxu0 %vm826_vm4, %v5373_v33  ;;  %4726 = vmatmul.mubr.msk.bf16.vlgmr.msra.gmra.mrb[8].mxu1 %vm826_vm4, %v5373_v33 }
 0x130   : > { %2742 = vmatpush1.bf16.msra.mxu0 %v4647_v58  ;;  %2785 = vmatpush1.bf16.msra.mxu1 %v4649_v59 }
 0x131   : > { %2743 = vmatprep.subr.bf16.mxu0 %v4664_v60  ;;  %2786 = vmatprep.subr.bf16.mxu1 %v4666_v61 }
 0x132   : > { %2773 = vmatprep.mubr.bf16.mxu0 %v5159_v9  ;;  %2816 = vmatprep.mubr.bf16.mxu1 %v5159_v9  ;;  %v4713_v9 = vcombine.low %v2055_v51, %v2055_v51 }
 0x134   : > { %2744 = vmatpush1.bf16.msra.mxu0 %v4663_v2  ;;  %2787 = vmatpush1.bf16.msra.mxu1 %v4665_v3  ;;  %v2478_v23 = vsel %vm830_vm2, %v4713_v9, 0  ;;  %v5492_v2 = vsub.s32 5, %v5467_v25  ;;  %v5495_v3 = vsub.s32 6, %v5467_v25 }
 0x135   : > { %2745 = vmatprep.subr.bf16.mxu0 %v4680_v4  ;;  %2788 = vmatprep.subr.bf16.mxu1 %v4682_v5  ;;  %v2882_v4 = vrot.slane %v2859_v27, %v5489_v1  ;;  %v5499_v5 = vsub.s32 7, %v5467_v25 }
 0x136   : > { %v2886_v6 = vrot.slane %v2859_v27, %v5492_v2  ;;  %v2890_v7 = vrot.slane %v2859_v27, %v5495_v3 }
 0x138   : > { %2746 = vmatpush1.bf16.msra.mxu0 %v4679_v12  ;;  %2789 = vmatpush1.bf16.msra.mxu1 %v4681_v13 }
 0x139   : > { %2747 = vmatprep.subr.bf16.mxu0 %v4696_v14  ;;  %2790 = vmatprep.subr.bf16.mxu1 %v4698_v15  ;;  %v2894_v14 = vrot.slane %v2859_v27, %v5499_v5 }
 0x13c   : > { %2748 = vmatpush1.bf16.msra.mxu0 %v4695_v17  ;;  %2791 = vmatpush1.bf16.msra.mxu1 %v4697_v18 }
 0x13d   : > { %4727 = vmatprep.subr.msk.bf16.mxu0 %vm830_vm2, %v4712_v19  ;;  %4729 = vmatprep.subr.msk.bf16.mxu1 %vm830_vm2, %v4714_v21 }
 0x140   : > { %2750 = vmatpush1.bf16.msra.mxu0 %v2472_v22  ;;  %2793 = vmatpush1.bf16.msra.mxu1 %v2478_v23 }
 0x143   : > { %4728 = vmatmul.mubr.msk.bf16.vlgmr.msra.gmra.mrb[12].mxu0 %vm826_vm4, %v5373_v33  ;;  %4730 = vmatmul.mubr.msk.bf16.vlgmr.msra.gmra.mrb[12].mxu1 %vm826_vm4, %v5373_v33  ;;  %v2866_v33 = vrot.slane %v2859_v27, %v5470_v26 }
 0x1da   : > { %v2517_v37 = vpop.f32.mrb[0].mxu0  ;;  %v2560_v40 = vpop.f32.mrb[0].mxu1 }
 0x1db   : > { %v2943_v39 = vadd.f32 %v2866_v33, %v2517_v37  ;;  %v2519_v41 = vpop.f32.mrb[1].mxu0  ;;  %v2945_v42 = vadd.f32 %v2874_v35, %v2560_v40  ;;  %v2562_v10 = vpop.f32.mrb[1].mxu1 }
 0x1dc   : > { %v2944_v43 = vadd.f32 %v2870_v36, %v2519_v41  ;;  %v2521_v44 = vpop.f32.mrb[2].mxu0  ;;  %v2564_v47 = vpop.f32.mrb[2].mxu1  ;;  %v2946_v50 = vadd.f32 %v2878_v38, %v2562_v10 }
 0x1dd   : > { %v2975_v45 = vmax.f32 %v2943_v39, 0.0  ;;  %v2959_v46 = vadd.f32 %v2866_v33, %v2521_v44  ;;  %v2523_v48 = vpop.f32.mrb[3].mxu0  ;;  %v2961_v52 = vadd.f32 %v2874_v35, %v2564_v47  ;;  %v2566_v29 = vpop.f32.mrb[3].mxu1  ;;  %v2977_v53 = vmax.f32 %v2945_v42, 0.0 }
 0x1de   : > { %v2976_v49 = vmax.f32 %v2944_v43, 0.0  ;;  %v2960_v28 = vadd.f32 %v2870_v36, %v2523_v48  ;;  %v2962_v56 = vadd.f32 %v2878_v38, %v2566_v29  ;;  %v2978_v57 = vmax.f32 %v2946_v50, 0.0  ;;  %v2860_v48 = vld [vmem:[%s5606_s2 + $0x8] sm:$0xff] }
 0x1df   : > { %v2991_v32 = vmax.f32 %v2959_v46, 0.0  ;;  %v2993_v59 = vmax.f32 %v2961_v52, 0.0  ;;  %v2902_v50 = vrot.slane %v2860_v48, %v5479_v31  ;;  %v2906_v52 = vrot.slane %v2860_v48, %v5476_v30 }
 0x1e0   : > { %v3007_v54 = vadd.f32 %v2976_v49, %v2975_v45  ;;  %v2992_v55 = vmax.f32 %v2960_v28, 0.0  ;;  %v2994_v62 = vmax.f32 %v2962_v56, 0.0  ;;  %v2898_v49 = vrot.slane %v2860_v48, %v5470_v26 }
 0x1e2   : > { %v3009_v58 = vadd.f32 %v3007_v54, %v2977_v53  ;;  %v3008_v60 = vadd.f32 %v2992_v55, %v2991_v32  ;;  %v2910_v54 = vrot.slane %v2860_v48, %v5482_v34 }
 0x1e4   : > { %v3011_v61 = vadd.f32 %v3009_v58, %v2978_v57  ;;  %v3010_v63 = vadd.f32 %v3008_v60, %v2993_v59 }
 0x1e6   : > { %v3012_v0 = vadd.f32 %v3010_v63, %v2994_v62 }
 0x1ee   : > { %v2603_v8 = vpop.f32.mrb[4].mxu0  ;;  %v2646_v12 = vpop.f32.mrb[4].mxu1 }
 0x1ef   : > { %v2947_v11 = vadd.f32 %v2882_v4, %v2603_v8  ;;  %v2605_v13 = vpop.f32.mrb[5].mxu0  ;;  %v2648_v16 = vpop.f32.mrb[5].mxu1  ;;  %v2949_v18 = vadd.f32 %v2890_v7, %v2646_v12 }
 0x1f0   : > { %v2948_v15 = vadd.f32 %v2886_v6, %v2605_v13  ;;  %v2607_v51 = vpop.f32.mrb[6].mxu0  ;;  %v2650_v20 = vpop.f32.mrb[6].mxu1  ;;  %v2950_v33 = vadd.f32 %v2894_v14, %v2648_v16 }
 0x1f1   : > { %v2979_v17 = vmax.f32 %v2947_v11, 0.0  ;;  %v2963_v19 = vadd.f32 %v2882_v4, %v2607_v51  ;;  %v2609_v21 = vpop.f32.mrb[7].mxu0  ;;  %v2652_v23 = vpop.f32.mrb[7].mxu1  ;;  %v2965_v36 = vadd.f32 %v2890_v7, %v2650_v20  ;;  %v2981_v38 = vmax.f32 %v2949_v18, 0.0 }
 0x1f2   : > { %v2980_v9 = vmax.f32 %v2948_v15, 0.0  ;;  %v2964_v22 = vadd.f32 %v2886_v6, %v2609_v21  ;;  %v2966_v27 = vadd.f32 %v2894_v14, %v2652_v23  ;;  %v2982_v41 = vmax.f32 %v2950_v33, 0.0 }
 0x1f3   : > { %v3013_v24 = vadd.f32 %v3011_v61, %v2979_v17  ;;  %v2995_v35 = vmax.f32 %v2963_v19, 0.0  ;;  %v2997_v43 = vmax.f32 %v2965_v36, 0.0  ;;  %v2914_v23 = vrot.slane %v2860_v48, %v5489_v1 }
 0x1f4   : > { %v2996_v37 = vmax.f32 %v2964_v22, 0.0  ;;  %v2998_v45 = vmax.f32 %v2966_v27, 0.0  ;;  %v2922_v33 = vrot.slane %v2860_v48, %v5495_v3 }
 0x1f5   : > { %v3015_v39 = vadd.f32 %v3013_v24, %v2980_v9  ;;  %v3014_v40 = vadd.f32 %v3012_v0, %v2995_v35  ;;  %v2918_v24 = vrot.slane %v2860_v48, %v5492_v2 }
 0x1f7   : > { %v3017_v42 = vadd.f32 %v3015_v39, %v2981_v38  ;;  %v3016_v10 = vadd.f32 %v3014_v40, %v2996_v37  ;;  %v2926_v39 = vrot.slane %v2860_v48, %v5499_v5 }
 0x1f9   : > { %v3019_v44 = vadd.f32 %v3017_v42, %v2982_v41  ;;  %v3018_v46 = vadd.f32 %v3016_v10, %v2997_v43 }
 0x1fb   : > { %v3020_v47 = vadd.f32 %v3018_v46, %v2998_v45 }
 0x202   : > { %v2689_v28 = vpop.f32.mrb[8].mxu0  ;;  %v2732_v32 = vpop.f32.mrb[8].mxu1 }
 0x203   : > { %v2951_v29 = vadd.f32 %v2898_v49, %v2689_v28  ;;  %v2691_v53 = vpop.f32.mrb[9].mxu0  ;;  %v2734_v56 = vpop.f32.mrb[9].mxu1  ;;  %v2953_v59 = vadd.f32 %v2906_v52, %v2732_v32 }
 0x204   : > { %v2952_v55 = vadd.f32 %v2902_v50, %v2691_v53  ;;  %v2693_v57 = vpop.f32.mrb[10].mxu0  ;;  %v2736_v61 = vpop.f32.mrb[10].mxu1  ;;  %v2954_v7 = vadd.f32 %v2910_v54, %v2734_v56 }
 0x205   : > { %v2983_v58 = vmax.f32 %v2951_v29, 0.0  ;;  %v2967_v60 = vadd.f32 %v2898_v49, %v2693_v57  ;;  %v2695_v62 = vpop.f32.mrb[11].mxu0  ;;  %v2738_v4 = vpop.f32.mrb[11].mxu1  ;;  %v2969_v11 = vadd.f32 %v2906_v52, %v2736_v61  ;;  %v2985_v13 = vmax.f32 %v2953_v59, 0.0 }
 0x206   : > { %v2984_v63 = vmax.f32 %v2952_v55, 0.0  ;;  %v2968_v0 = vadd.f32 %v2902_v50, %v2695_v62  ;;  %v2970_v16 = vadd.f32 %v2910_v54, %v2738_v4  ;;  %v2986_v51 = vmax.f32 %v2954_v7, 0.0 }
 0x207   : > { %v3021_v6 = vadd.f32 %v3019_v44, %v2983_v58  ;;  %v2999_v8 = vmax.f32 %v2967_v60, 0.0  ;;  %v3001_v18 = vmax.f32 %v2969_v11, 0.0 }
 0x208   : > { %v3000_v12 = vmax.f32 %v2968_v0, 0.0  ;;  %v3002_v21 = vmax.f32 %v2970_v16, 0.0 }
 0x209   : > { %v3023_v14 = vadd.f32 %v3021_v6, %v2984_v63  ;;  %v3022_v15 = vadd.f32 %v3020_v47, %v2999_v8 }
 0x20b   : > { %v3025_v17 = vadd.f32 %v3023_v14, %v2985_v13  ;;  %v3024_v19 = vadd.f32 %v3022_v15, %v3000_v12 }
 0x20d   : > { %v3027_v20 = vadd.f32 %v3025_v17, %v2986_v51  ;;  %v3026_v9 = vadd.f32 %v3024_v19, %v3001_v18  ;;  %v3037_v51 = vld [vmem:[#allocation2] sm:$0x3] }
 0x20f   : > { %v3028_v22 = vadd.f32 %v3026_v9, %v3002_v21  ;;  %v3072_v21 = vld [vmem:[#allocation6 + $0x40] sm:$0xff] (!%p4731_p4)  ;;  %v3065_v9 = vld [vmem:[#allocation6 + $0x8] sm:$0xff] (!%p4731_p4) }
 0x216   : > { %v2775_v35 = vpop.f32.mrb[12].mxu0  ;;  %v2818_v37 = vpop.f32.mrb[12].mxu1 }
 0x217   : > { %v2955_v36 = vadd.f32 %v2914_v23, %v2775_v35  ;;  %v2777_v38 = vpop.f32.mrb[13].mxu0  ;;  %v2820_v27 = vpop.f32.mrb[13].mxu1  ;;  %v2957_v43 = vadd.f32 %v2922_v33, %v2818_v37  ;;  %v3088_v35 = vld [vmem:[#allocation6 + $0xc0] sm:$0xff] (!%p4731_p4) }
 0x218   : > { %v2956_v40 = vadd.f32 %v2918_v24, %v2777_v38  ;;  %v2779_v41 = vpop.f32.mrb[14].mxu0  ;;  %v2822_v44 = vpop.f32.mrb[14].mxu1  ;;  %v2958_v52 = vadd.f32 %v2926_v39, %v2820_v27  ;;  %v3089_v27 = vld [vmem:[#allocation6 + $0xc8] sm:$0xff] (!%p4731_p4) }
 0x219   : > { %v2987_v42 = vmax.f32 %v2955_v36, 0.0  ;;  %v2971_v10 = vadd.f32 %v2914_v23, %v2779_v41  ;;  %v2781_v45 = vpop.f32.mrb[15].mxu0  ;;  %v2824_v49 = vpop.f32.mrb[15].mxu1  ;;  %v2973_v29 = vadd.f32 %v2922_v33, %v2822_v44  ;;  %v2989_v53 = vmax.f32 %v2957_v43, 0.0  ;;  %v3073_v23 = vld [vmem:[#allocation6 + $0x48] sm:$0xff] (!%p4731_p4)  ;;  %v3080_v33 = vld [vmem:[#allocation6 + $0x80] sm:$0xff] (!%p4731_p4) }
 0x21a   : > { %v2988_v46 = vmax.f32 %v2956_v40, 0.0  ;;  %v2972_v47 = vadd.f32 %v2918_v24, %v2781_v45  ;;  %v2974_v48 = vadd.f32 %v2926_v39, %v2824_v49  ;;  %v2990_v56 = vmax.f32 %v2958_v52, 0.0  ;;  %v3081_v40 = vld [vmem:[#allocation6 + $0x88] sm:$0xff] (!%p4731_p4)  ;;  %v3096_v41 = vld [vmem:[#allocation6 + $0x100] sm:$0xff] (!%p4731_p4) }
 0x21b   : > { %v3029_v50 = vadd.f32 %v3027_v20, %v2987_v42  ;;  %v3003_v28 = vmax.f32 %v2971_v10, 0.0  ;;  %v3005_v58 = vmax.f32 %v2973_v29, 0.0  ;;  %v3064_v20 = vld [vmem:[#allocation6] sm:$0xff] (!%p4731_p4)  ;;  %v5160_v36 = vmov (!%p4731_p4), 0   ;;  %v3097_v10 = vld [vmem:[#allocation6 + $0x108] sm:$0xff] (!%p4731_p4) }
 0x21c   : > { %v3004_v32 = vmax.f32 %v2972_v47, 0.0  ;;  %v3006_v61 = vmax.f32 %v2974_v48, 0.0  ;;  %v4732_v24 = vcombine.low (!%p4731_p4), %v3064_v20, %v3072_v21  ;;  %3948 = vmatprep.mubr.bf16.mxu0 (!%p4731_p4), %v5160_v36  ;;  %3989 = vmatprep.mubr.bf16.mxu1 (!%p4731_p4), %v5160_v36  ;;  %v4735_v37 = vcombine.high (!%p4731_p4), %v3065_v9, %v3073_v23  ;;  %v3104_v43 = vld [vmem:[#allocation6 + $0x140] sm:$0xff] (!%p4731_p4)  ;;  %v3105_v44 = vld [vmem:[#allocation6 + $0x148] sm:$0xff] (!%p4731_p4) }
 0x21d   : > { %v3031_v54 = vadd.f32 %v3029_v50, %v2988_v46  ;;  %v3030_v55 = vadd.f32 %v3028_v22, %v3003_v28  ;;  %v4733_v22 = vcombine.high (!%p4731_p4), %v3064_v20, %v3072_v21  ;;  %v4734_v38 = vcombine.low (!%p4731_p4), %v3065_v9, %v3073_v23  ;;  %v3112_v50 = vld [vmem:[#allocation6 + $0x180] sm:$0xff] (!%p4731_p4)  ;;  %v3113_v28 = vld [vmem:[#allocation6 + $0x188] sm:$0xff] (!%p4731_p4) }
 0x21e   : > { %v4749_v39 = vcombine.high (!%p4731_p4), %v3080_v33, %v3088_v35  ;;  %v4751_v42 = vcombine.high (!%p4731_p4), %v3081_v40, %v3089_v27  ;;  %3957 = vmatprep.subr.bf16.mxu1 (!%p4731_p4), %v4735_v37  ;;  %v4748_v45 = vcombine.low (!%p4731_p4), %v3080_v33, %v3088_v35  ;;  %v4750_v46 = vcombine.low (!%p4731_p4), %v3081_v40, %v3089_v27  ;;  %v3120_v52 = vld [vmem:[#allocation6 + $0x1c0] sm:$0xff] (!%p4731_p4)  ;;  %v3121_v29 = vld [vmem:[#allocation6 + $0x1c8] sm:$0xff] (!%p4731_p4)  ;;  %v3067_v27 = vld [vmem:[#allocation6 + $0x18] sm:$0xff] (!%p4731_p4) }
 0x21f   : > { %v3033_v57 = vadd.f32 %v3031_v54, %v2989_v53  ;;  %v3032_v59 = vadd.f32 %v3030_v55, %v3004_v32  ;;  %3916 = vmatprep.subr.bf16.mxu0 (!%p4731_p4), %v4733_v22  ;;  %3958 = vmatpush1.bf16.msra.mxu1 (!%p4731_p4), %v4734_v38  ;;  %v4765_v47 = vcombine.high (!%p4731_p4), %v3096_v41, %v3104_v43  ;;  %v3128_v48 = vld [vmem:[#allocation6 + $0x200] sm:$0xff] (!%p4731_p4)  ;;  %v3177_v9 = vld [vmem:[#allocation6 + $0x388] sm:$0xff] (!%p4731_p4)  ;;  %v3066_v38 = vld [vmem:[#allocation6 + $0x10] sm:$0xff] (!%p4731_p4) }
 0x220   : > { %3917 = vmatpush1.bf16.msra.mxu0 (!%p4731_p4), %v4732_v24  ;;  %3959 = vmatprep.subr.bf16.mxu1 (!%p4731_p4), %v4751_v42  ;;  %v4767_v49 = vcombine.high (!%p4731_p4), %v3097_v10, %v3105_v44  ;;  %v4764_v32 = vcombine.low (!%p4731_p4), %v3096_v41, %v3104_v43  ;;  %v4766_v53 = vcombine.low (!%p4731_p4), %v3097_v10, %v3105_v44  ;;  %v3176_v20 = vld [vmem:[#allocation6 + $0x380] sm:$0xff] (!%p4731_p4)  ;;  %v3185_v22 = vld [vmem:[#allocation6 + $0x3c8] sm:$0xff] (!%p4731_p4)  ;;  %v3075_v41 = vld [vmem:[#allocation6 + $0x58] sm:$0xff] (!%p4731_p4) }
 0x221   : > { %v3035_v60 = vadd.f32 %v3033_v57, %v2990_v56  ;;  %v3034_v62 = vadd.f32 %v3032_v59, %v3005_v58  ;;  %3918 = vmatprep.subr.bf16.mxu0 (!%p4731_p4), %v4749_v39  ;;  %v4781_v54 = vcombine.high (!%p4731_p4), %v3112_v50, %v3120_v52  ;;  %v4783_v55 = vcombine.high (!%p4731_p4), %v3113_v28, %v3121_v29  ;;  %v3136_v56 = vld [vmem:[#allocation6 + $0x240] sm:$0xff] (!%p4731_p4)  ;;  %v3129_v57 = vld [vmem:[#allocation6 + $0x208] sm:$0xff] (!%p4731_p4)  ;;  %v3074_v39 = vld [vmem:[#allocation6 + $0x50] sm:$0xff] (!%p4731_p4) }
 0x222   : > { %v3137_v58 = vld [vmem:[#allocation6 + $0x248] sm:$0xff] (!%p4731_p4)  ;;  %v4780_v59 = vcombine.low (!%p4731_p4), %v3112_v50, %v3120_v52  ;;  %v3184_v21 = vld [vmem:[#allocation6 + $0x3c0] sm:$0xff] (!%p4731_p4)  ;;  %v4847_v37 = vcombine.high (!%p4731_p4), %v3177_v9, %v3185_v22  ;;  %v4846_v43 = vcombine.low (!%p4731_p4), %v3177_v9, %v3185_v22  ;;  %v4737_v10 = vcombine.high (!%p4731_p4), %v3066_v38, %v3074_v39  ;;  %v3091_v50 = vld [vmem:[#allocation6 + $0xd8] sm:$0xff] (!%p4731_p4) }
 0x223   : > { %v3038_v63 = vrot.slane %v3035_v60, 4  ;;  %v3036_v0 = vadd.f32 %v3034_v62, %v3006_v61  ;;  %3960 = vmatpush1.bf16.msra.mxu1 (!%p4731_p4), %v4750_v46  ;;  %v4797_v61 = vcombine.high (!%p4731_p4), %v3128_v48, %v3136_v56  ;;  %v4799_v62 = vcombine.high (!%p4731_p4), %v3129_v57, %v3137_v58  ;;  %v3090_v46 = vld [vmem:[#allocation6 + $0xd0] sm:$0xff] (!%p4731_p4) }
 0x224   : > { %3919 = vmatpush1.bf16.msra.mxu0 (!%p4731_p4), %v4748_v45  ;;  %3961 = vmatprep.subr.bf16.mxu1 (!%p4731_p4), %v4767_v49  ;;  %v4845_v35 = vcombine.high (!%p4731_p4), %v3176_v20, %v3184_v21  ;;  %v4844_v42 = vcombine.low (!%p4731_p4), %v3176_v20, %v3184_v21  ;;  %v4739_v44 = vcombine.high (!%p4731_p4), %v3067_v27, %v3075_v41  ;;  %v3082_v45 = vld [vmem:[#allocation6 + $0x90] sm:$0xff] (!%p4731_p4)  ;;  %v3083_v49 = vld [vmem:[#allocation6 + $0x98] sm:$0xff] (!%p4731_p4) }
 0x225   : > { %v3039_v4 = vadd.f32 %v3038_v63, %v3035_v60  ;;  %v3044_v6 = vrot.slane %v3036_v0, 4  ;;  %3920 = vmatprep.subr.bf16.mxu0 (!%p4731_p4), %v4765_v47  ;;  %v4782_v60 = vcombine.low (!%p4731_p4), %v3113_v28, %v3121_v29  ;;  %v3144_v63 = vld [vmem:[#allocation6 + $0x280] sm:$0xff] (!%p4731_p4)  ;;  %v4736_v52 = vcombine.low (!%p4731_p4), %v3066_v38, %v3074_v39  ;;  %v3155_v20 = vld [vmem:[#allocation6 + $0x2d8] sm:$0xff] (!%p4731_p4) }
 0x226   : > { %v4738_v28 = vcombine.low (!%p4731_p4), %v3067_v27, %v3075_v41  ;;  %v4753_v29 = vcombine.high (!%p4731_p4), %v3082_v45, %v3090_v46  ;;  %v3178_v41 = vld [vmem:[#allocation6 + $0x390] sm:$0xff] (!%p4731_p4) }
 0x227   : > { %v3040_v7 = vrot.slane %v3039_v4, 2  ;;  %v3045_v8 = vadd.f32 %v3044_v6, %v3036_v0  ;;  %3962 = vmatpush1.bf16.msra.mxu1 (!%p4731_p4), %v4766_v53  ;;  %v3152_v0 = vld [vmem:[#allocation6 + $0x2c0] sm:$0xff] (!%p4731_p4)  ;;  %v3153_v6 = vld [vmem:[#allocation6 + $0x2c8] sm:$0xff] (!%p4731_p4)  ;;  %v3098_v53 = vld [vmem:[#allocation6 + $0x110] sm:$0xff] (!%p4731_p4) }
 0x228   : > { %3921 = vmatpush1.bf16.msra.mxu0 (!%p4731_p4), %v4764_v32  ;;  %3963 = vmatprep.subr.bf16.mxu1 (!%p4731_p4), %v4783_v55  ;;  %v4755_v32 = vcombine.high (!%p4731_p4), %v3083_v49, %v3091_v50  ;;  %v3099_v55 = vld [vmem:[#allocation6 + $0x118] sm:$0xff] (!%p4731_p4) }
 0x229   : > { %v3041_v11 = vadd.f32 %v3040_v7, %v3039_v4  ;;  %v3046_v12 = vrot.slane %v3045_v8, 2  ;;  %3922 = vmatprep.subr.bf16.mxu0 (!%p4731_p4), %v4781_v54  ;;  %v3145_v4 = vld [vmem:[#allocation6 + $0x288] sm:$0xff] (!%p4731_p4)  ;;  %v4796_v7 = vcombine.low (!%p4731_p4), %v3128_v48, %v3136_v56  ;;  %v3106_v54 = vld [vmem:[#allocation6 + $0x150] sm:$0xff] (!%p4731_p4)  ;;  %v3107_v48 = vld [vmem:[#allocation6 + $0x158] sm:$0xff] (!%p4731_p4)  ;;  %v4752_v56 = vcombine.low (!%p4731_p4), %v3082_v45, %v3090_v46 }
 0x22b   : > { %v3042_v13 = vrot.slane %v3041_v11, 1  ;;  %v3047_v14 = vadd.f32 %v3046_v12, %v3045_v8  ;;  %3964 = vmatpush1.bf16.msra.mxu1 (!%p4731_p4), %v4782_v60  ;;  %v4798_v8 = vcombine.low (!%p4731_p4), %v3129_v57, %v3137_v58  ;;  %v4815_v12 = vcombine.high (!%p4731_p4), %v3145_v4, %v3153_v6  ;;  %v3114_v60 = vld [vmem:[#allocation6 + $0x190] sm:$0xff] (!%p4731_p4) }
 0x22c   : > { %3923 = vmatpush1.bf16.msra.mxu0 (!%p4731_p4), %v4780_v59  ;;  %3965 = vmatprep.subr.bf16.mxu1 (!%p4731_p4), %v4799_v62  ;;  %v4754_v57 = vcombine.low (!%p4731_p4), %v3083_v49, %v3091_v50  ;;  %v4769_v58 = vcombine.high (!%p4731_p4), %v3098_v53, %v3106_v54  ;;  %v4771_v59 = vcombine.high (!%p4731_p4), %v3099_v55, %v3107_v48  ;;  %v3115_v62 = vld [vmem:[#allocation6 + $0x198] sm:$0xff] (!%p4731_p4)  ;;  %v3068_v50 = vld [vmem:[#allocation6 + $0x20] sm:$0xff] (!%p4731_p4) }
 0x22d   : > { %v3048_v15 = vrot.slane %v3047_v14, 1  ;;  %v3043_v16 = vadd.f32 %v3042_v13, %v3041_v11  ;;  %3924 = vmatprep.subr.bf16.mxu0 (!%p4731_p4), %v4797_v61  ;;  %v4813_v11 = vcombine.high (!%p4731_p4), %v3144_v63, %v3152_v0  ;;  %v3160_v13 = vld [vmem:[#allocation6 + $0x300] sm:$0xff] (!%p4731_p4)  ;;  %v3122_v61 = vld [vmem:[#allocation6 + $0x1d0] sm:$0xff] (!%p4731_p4) }
 0x22e   : > { %3060 = sbr.rel (%p4731_p4) target bundleno = 894 (0x37e), region = 56 }
 0x22f   : > { %v3049_v17 = vadd.f32 %v3048_v15, %v3047_v14  ;;  %v3168_v14 = vld [vmem:[#allocation6 + $0x340] sm:$0xff] (!%p4731_p4)  ;;  %v3161_v15 = vld [vmem:[#allocation6 + $0x308] sm:$0xff] (!%p4731_p4)  ;;  %3966 = vmatpush1.bf16.msra.mxu1 (!%p4731_p4), %v4798_v8  ;;  %v3130_v8 = vld [vmem:[#allocation6 + $0x210] sm:$0xff] (!%p4731_p4) }
 0x230   : > { %3925 = vmatpush1.bf16.msra.mxu0 (!%p4731_p4), %v4796_v7  ;;  %3967 = vmatprep.subr.bf16.mxu1 (!%p4731_p4), %v4815_v12  ;;  %v4828_v23 = vcombine.low (!%p4731_p4), %v3160_v13, %v3168_v14  ;;  %v3131_v12 = vld [vmem:[#allocation6 + $0x218] sm:$0xff] (!%p4731_p4) }
 0x231   : > { %v3053_v18 = vsel %vm3052_vm8, %v3049_v17, %v3043_v16  ;;  %v3169_v16 = vld [vmem:[#allocation6 + $0x348] sm:$0xff] (!%p4731_p4)  ;;  %3926 = vmatprep.subr.bf16.mxu0 (!%p4731_p4), %v4813_v11  ;;  %v4814_v17 = vcombine.low (!%p4731_p4), %v3145_v4, %v3153_v6  ;;  %v4770_v4 = vcombine.low (!%p4731_p4), %v3099_v55, %v3107_v48  ;;  %v4785_v6 = vcombine.high (!%p4731_p4), %v3114_v60, %v3122_v61  ;;  %v3138_v11 = vld [vmem:[#allocation6 + $0x250] sm:$0xff] (!%p4731_p4)  ;;  %v3084_v48 = vld [vmem:[#allocation6 + $0xa0] sm:$0xff] (!%p4731_p4) }
 0x232   : > { %v3055_v19 = vadd.f32 %v3053_v18, %v3037_v51  ;;  %v4812_v51 = vcombine.low (!%p4731_p4), %v3144_v63, %v3152_v0  ;;  %v4829_v18 = vcombine.high (!%p4731_p4), %v3160_v13, %v3168_v14  ;;  %v4830_v33 = vcombine.low (!%p4731_p4), %v3161_v15, %v3169_v16  ;;  %v3123_v63 = vld [vmem:[#allocation6 + $0x1d8] sm:$0xff] (!%p4731_p4) }
 0x233   : > { %3968 = vmatpush1.bf16.msra.mxu1 (!%p4731_p4), %v4814_v17  ;;  %v4768_v0 = vcombine.low (!%p4731_p4), %v3098_v53, %v3106_v54  ;;  %v4787_v7 = vcombine.high (!%p4731_p4), %v3115_v62, %v3123_v63  ;;  %v3139_v13 = vld [vmem:[#allocation6 + $0x258] sm:$0xff] (!%p4731_p4)  ;;  %v4784_v14 = vcombine.low (!%p4731_p4), %v3114_v60, %v3122_v61  ;;  %v3146_v17 = vld [vmem:[#allocation6 + $0x290] sm:$0xff] (!%p4731_p4)  ;;  %v4800_v21 = vcombine.low (!%p4731_p4), %v3130_v8, %v3138_v11 }
 0x234   : > { %3056 = vst [vmem:[#allocation2] sm:$0x3] %v3055_v19  ;;  %v4831_v19 = vcombine.high (!%p4731_p4), %v3161_v15, %v3169_v16  ;;  %3927 = vmatpush1.bf16.msra.mxu0 (!%p4731_p4), %v4812_v51  ;;  %v4786_v15 = vcombine.low (!%p4731_p4), %v3115_v62, %v3123_v63  ;;  %v4801_v16 = vcombine.high (!%p4731_p4), %v3130_v8, %v3138_v11  ;;  %v3100_v63 = vld [vmem:[#allocation6 + $0x120] sm:$0xff] (!%p4731_p4) }
 0x235   : > { %3928 = vmatprep.subr.bf16.mxu0 %v4829_v18  ;;  %v4803_v51 = vcombine.high %v3131_v12, %v3139_v13  ;;  %v3154_v18 = vld [vmem:[#allocation6 + $0x2d0] sm:$0xff]  ;;  %v4802_v9 = vcombine.low %v3131_v12, %v3139_v13  ;;  %v3116_v13 = vld [vmem:[#allocation6 + $0x1a0] sm:$0xff] }
 0x236   : > { %3969 = vmatprep.subr.bf16.mxu1 %v4831_v19  ;;  %v3147_v19 = vld [vmem:[#allocation6 + $0x298] sm:$0xff]  ;;  %v4817_v22 = vcombine.high %v3146_v17, %v3154_v18  ;;  %v4816_v38 = vcombine.low %v3146_v17, %v3154_v18 }
 0x237   : > { %3970 = vmatpush1.bf16.msra.mxu1 %v4830_v33  ;;  %v3170_v33 = vld [vmem:[#allocation6 + $0x350] sm:$0xff]  ;;  %v4818_v39 = vcombine.low %v3147_v19, %v3155_v20 }
 0x238   : > { %3929 = vmatpush1.bf16.msra.mxu0 %v4828_v23  ;;  %3971 = vmatprep.subr.bf16.mxu1 %v4847_v37  ;;  %v4819_v23 = vcombine.high %v3147_v19, %v3155_v20  ;;  %v3171_v37 = vld [vmem:[#allocation6 + $0x358] sm:$0xff]  ;;  %v3132_v20 = vld [vmem:[#allocation6 + $0x220] sm:$0xff] }
 0x239   : > { %3930 = vmatprep.subr.bf16.mxu0 %v4845_v35  ;;  %v3163_v35 = vld [vmem:[#allocation6 + $0x318] sm:$0xff] }
 0x23a   : > { %v4835_v27 = vcombine.high %v3163_v35, %v3171_v37  ;;  %v4834_v45 = vcombine.low %v3163_v35, %v3171_v37  ;;  %v3148_v37 = vld [vmem:[#allocation6 + $0x2a0] sm:$0xff] }
 0x23b   : > { %v3061_v24 = vld [vmem:[#allocation2] sm:$0x3]  ;;  %3972 = vmatpush1.bf16.msra.mxu1 %v4846_v43 }
 0x23c   : > { %v3062_v40 = vmul.f32 0.00390625, %v3061_v24  ;;  %3931 = vmatpush1.bf16.msra.mxu0 %v4844_v42  ;;  %4039 = vmatprep.subr.bf16.mxu1 %v4739_v44  ;;  %v3162_v24 = vld [vmem:[#allocation6 + $0x310] sm:$0xff]  ;;  %v3179_v43 = vld [vmem:[#allocation6 + $0x398] sm:$0xff] }
 0x23d   : > { %3998 = vmatprep.subr.bf16.mxu0 %v4737_v10  ;;  %v3186_v42 = vld [vmem:[#allocation6 + $0x3d0] sm:$0xff]  ;;  %v3187_v10 = vld [vmem:[#allocation6 + $0x3d8] sm:$0xff]  ;;  %v4832_v44 = vcombine.low %v3162_v24, %v3170_v33 }
 0x23e   : > { %v5518_v47 = vpack.c.bf16 %v3062_v40, %v3062_v40  ;;  %v4833_v40 = vcombine.high %v3162_v24, %v3170_v33  ;;  %v4849_v46 = vcombine.high %v3178_v41, %v3186_v42  ;;  %v4851_v49 = vcombine.high %v3179_v43, %v3187_v10 }
 0x23f   : > { %v4850_v53 = vcombine.low %v3179_v43, %v3187_v10  ;;  %v3164_v10 = vld [vmem:[#allocation6 + $0x320] sm:$0xff] }
 0x240   : > { %3949 = vmatmul.mubr.bf16.vlgmr.msra.gmra.mrb[0].mxu0 %v5518_v47  ;;  %3990 = vmatmul.mubr.bf16.vlgmr.msra.gmra.mrb[0].mxu1 %v5518_v47 }
 0x241   : > { %3999 = vmatpush1.bf16.msra.mxu0 %v4736_v52  ;;  %4040 = vmatpush1.bf16.msra.mxu1 %v4738_v28  ;;  %v3076_v52 = vld [vmem:[#allocation6 + $0x60] sm:$0xff]  ;;  %v3069_v28 = vld [vmem:[#allocation6 + $0x28] sm:$0xff] }
 0x242   : > { %4000 = vmatprep.subr.bf16.mxu0 %v4753_v29  ;;  %4041 = vmatprep.subr.bf16.mxu1 %v4755_v32  ;;  %v3077_v29 = vld [vmem:[#allocation6 + $0x68] sm:$0xff]  ;;  %v4848_v32 = vcombine.low %v3178_v41, %v3186_v42  ;;  %v4741_v54 = vcombine.high %v3068_v50, %v3076_v52 }
 0x243   : > { %4030 = vmatprep.mubr.bf16.mxu0 %v5160_v36  ;;  %4071 = vmatprep.mubr.bf16.mxu1 %v5160_v36  ;;  %v4743_v55 = vcombine.high %v3069_v28, %v3077_v29  ;;  %v4742_v60 = vcombine.low %v3069_v28, %v3077_v29  ;;  %v3180_v29 = vld [vmem:[#allocation6 + $0x3a0] sm:$0xff] }
 0x245   : > { %4001 = vmatpush1.bf16.msra.mxu0 %v4752_v56  ;;  %4042 = vmatpush1.bf16.msra.mxu1 %v4754_v57  ;;  %v3092_v56 = vld [vmem:[#allocation6 + $0xe0] sm:$0xff]  ;;  %v3085_v57 = vld [vmem:[#allocation6 + $0xa8] sm:$0xff] }
 0x246   : > { %4002 = vmatprep.subr.bf16.mxu0 %v4769_v58  ;;  %4043 = vmatprep.subr.bf16.mxu1 %v4771_v59  ;;  %v3093_v58 = vld [vmem:[#allocation6 + $0xe8] sm:$0xff]  ;;  %v4740_v59 = vcombine.low %v3068_v50, %v3076_v52  ;;  %v4757_v61 = vcombine.high %v3084_v48, %v3092_v56 }
 0x247   : > { %v4759_v62 = vcombine.high %v3085_v57, %v3093_v58  ;;  %v4758_v8 = vcombine.low %v3085_v57, %v3093_v58  ;;  %v3070_v58 = vld [vmem:[#allocation6 + $0x30] sm:$0xff] }
 0x249   : > { %4003 = vmatpush1.bf16.msra.mxu0 %v4768_v0  ;;  %4044 = vmatpush1.bf16.msra.mxu1 %v4770_v4  ;;  %v3108_v0 = vld [vmem:[#allocation6 + $0x160] sm:$0xff]  ;;  %v3101_v4 = vld [vmem:[#allocation6 + $0x128] sm:$0xff] }
 0x24a   : > { %4004 = vmatprep.subr.bf16.mxu0 %v4785_v6  ;;  %4045 = vmatprep.subr.bf16.mxu1 %v4787_v7  ;;  %v3109_v6 = vld [vmem:[#allocation6 + $0x168] sm:$0xff]  ;;  %v4756_v7 = vcombine.low %v3084_v48, %v3092_v56  ;;  %v4773_v11 = vcombine.high %v3100_v63, %v3108_v0 }
 0x24b   : > { %v4775_v12 = vcombine.high %v3101_v4, %v3109_v6  ;;  %v4774_v17 = vcombine.low %v3101_v4, %v3109_v6  ;;  %v3086_v6 = vld [vmem:[#allocation6 + $0xb0] sm:$0xff] }
 0x24d   : > { %4005 = vmatpush1.bf16.msra.mxu0 %v4784_v14  ;;  %4046 = vmatpush1.bf16.msra.mxu1 %v4786_v15  ;;  %v3124_v14 = vld [vmem:[#allocation6 + $0x1e0] sm:$0xff]  ;;  %v3117_v15 = vld [vmem:[#allocation6 + $0x1a8] sm:$0xff] }
 0x24e   : > { %4006 = vmatprep.subr.bf16.mxu0 %v4801_v16  ;;  %4047 = vmatprep.subr.bf16.mxu1 %v4803_v51  ;;  %v3125_v16 = vld [vmem:[#allocation6 + $0x1e8] sm:$0xff]  ;;  %v4772_v51 = vcombine.low %v3100_v63, %v3108_v0  ;;  %v4789_v18 = vcombine.high %v3116_v13, %v3124_v14 }
 0x24f   : > { %v4791_v19 = vcombine.high %v3117_v15, %v3125_v16  ;;  %v4790_v24 = vcombine.low %v3117_v15, %v3125_v16  ;;  %v3102_v16 = vld [vmem:[#allocation6 + $0x130] sm:$0xff] }
 0x251   : > { %4007 = vmatpush1.bf16.msra.mxu0 %v4800_v21  ;;  %4048 = vmatpush1.bf16.msra.mxu1 %v4802_v9  ;;  %v3140_v21 = vld [vmem:[#allocation6 + $0x260] sm:$0xff]  ;;  %v3133_v9 = vld [vmem:[#allocation6 + $0x228] sm:$0xff] }
 0x252   : > { %4008 = vmatprep.subr.bf16.mxu0 %v4817_v22  ;;  %4049 = vmatprep.subr.bf16.mxu1 %v4819_v23  ;;  %v3141_v22 = vld [vmem:[#allocation6 + $0x268] sm:$0xff]  ;;  %v4788_v23 = vcombine.low %v3116_v13, %v3124_v14  ;;  %v4805_v33 = vcombine.high %v3132_v20, %v3140_v21 }
 0x253   : > { %v4807_v35 = vcombine.high %v3133_v9, %v3141_v22  ;;  %v4806_v41 = vcombine.low %v3133_v9, %v3141_v22  ;;  %v3118_v22 = vld [vmem:[#allocation6 + $0x1b0] sm:$0xff] }
 0x255   : > { %4009 = vmatpush1.bf16.msra.mxu0 %v4816_v38  ;;  %4050 = vmatpush1.bf16.msra.mxu1 %v4818_v39  ;;  %v3156_v38 = vld [vmem:[#allocation6 + $0x2e0] sm:$0xff]  ;;  %v3149_v39 = vld [vmem:[#allocation6 + $0x2a8] sm:$0xff] }
 0x256   : > { %4010 = vmatprep.subr.bf16.mxu0 %v4833_v40  ;;  %4051 = vmatprep.subr.bf16.mxu1 %v4835_v27  ;;  %v3157_v40 = vld [vmem:[#allocation6 + $0x2e8] sm:$0xff]  ;;  %v4804_v27 = vcombine.low %v3132_v20, %v3140_v21  ;;  %v4821_v42 = vcombine.high %v3148_v37, %v3156_v38 }
 0x257   : > { %v4823_v43 = vcombine.high %v3149_v39, %v3157_v40  ;;  %v4822_v50 = vcombine.low %v3149_v39, %v3157_v40  ;;  %v3134_v40 = vld [vmem:[#allocation6 + $0x230] sm:$0xff] }
 0x259   : > { %4011 = vmatpush1.bf16.msra.mxu0 %v4832_v44  ;;  %4052 = vmatpush1.bf16.msra.mxu1 %v4834_v45  ;;  %v3172_v44 = vld [vmem:[#allocation6 + $0x360] sm:$0xff]  ;;  %v3165_v45 = vld [vmem:[#allocation6 + $0x328] sm:$0xff] }
 0x25a   : > { %4012 = vmatprep.subr.bf16.mxu0 %v4849_v46  ;;  %4053 = vmatprep.subr.bf16.mxu1 %v4851_v49  ;;  %v3173_v46 = vld [vmem:[#allocation6 + $0x368] sm:$0xff]  ;;  %v4820_v49 = vcombine.low %v3148_v37, %v3156_v38  ;;  %v4837_v52 = vcombine.high %v3164_v10, %v3172_v44 }
 0x25b   : > { %v4839_v28 = vcombine.high %v3165_v45, %v3173_v46  ;;  %v4838_v48 = vcombine.low %v3165_v45, %v3173_v46  ;;  %v3150_v45 = vld [vmem:[#allocation6 + $0x2b0] sm:$0xff] }
 0x25c   : > { %v3158_v46 = vld [vmem:[#allocation6 + $0x2f0] sm:$0xff] }
 0x25d   : > { %4013 = vmatpush1.bf16.msra.mxu0 %v4848_v32  ;;  %4054 = vmatpush1.bf16.msra.mxu1 %v4850_v53  ;;  %v3188_v32 = vld [vmem:[#allocation6 + $0x3e0] sm:$0xff]  ;;  %v3181_v53 = vld [vmem:[#allocation6 + $0x3a8] sm:$0xff] }
 0x25e   : > { %4080 = vmatprep.subr.bf16.mxu0 %v4741_v54  ;;  %4121 = vmatprep.subr.bf16.mxu1 %v4743_v55  ;;  %v3189_v54 = vld [vmem:[#allocation6 + $0x3e8] sm:$0xff]  ;;  %v4836_v55 = vcombine.low %v3164_v10, %v3172_v44  ;;  %v4853_v56 = vcombine.high %v3180_v29, %v3188_v32 }
 0x25f   : > { %v4855_v57 = vcombine.high %v3181_v53, %v3189_v54  ;;  %v4854_v63 = vcombine.low %v3181_v53, %v3189_v54  ;;  %v3166_v53 = vld [vmem:[#allocation6 + $0x330] sm:$0xff] }
 0x260   : > { %4031 = vmatmul.mubr.bf16.vlgmr.msra.gmra.mrb[4].mxu0 %v5518_v47  ;;  %4072 = vmatmul.mubr.bf16.vlgmr.msra.gmra.mrb[4].mxu1 %v5518_v47  ;;  %v3174_v54 = vld [vmem:[#allocation6 + $0x370] sm:$0xff] }
 0x261   : > { %4081 = vmatpush1.bf16.msra.mxu0 %v4740_v59  ;;  %4122 = vmatpush1.bf16.msra.mxu1 %v4742_v60  ;;  %v3078_v59 = vld [vmem:[#allocation6 + $0x70] sm:$0xff]  ;;  %v3071_v60 = vld [vmem:[#allocation6 + $0x38] sm:$0xff] }
 0x262   : > { %4082 = vmatprep.subr.bf16.mxu0 %v4757_v61  ;;  %4123 = vmatprep.subr.bf16.mxu1 %v4759_v62  ;;  %v3079_v61 = vld [vmem:[#allocation6 + $0x78] sm:$0xff]  ;;  %v4852_v62 = vcombine.low %v3180_v29, %v3188_v32  ;;  %v4745_v0 = vcombine.high %v3070_v58, %v3078_v59  ;;  %v4825_v29 = vcombine.high %v3150_v45, %v3158_v46 }
 0x263   : > { %4112 = vmatprep.mubr.bf16.mxu0 %v5160_v36  ;;  %4153 = vmatprep.mubr.bf16.mxu1 %v5160_v36  ;;  %v4747_v4 = vcombine.high %v3071_v60, %v3079_v61  ;;  %v4746_v13 = vcombine.low %v3071_v60, %v3079_v61  ;;  %v3182_v60 = vld [vmem:[#allocation6 + $0x3b0] sm:$0xff] }
 0x264   : > { %v3190_v61 = vld [vmem:[#allocation6 + $0x3f0] sm:$0xff] }
 0x265   : > { %4083 = vmatpush1.bf16.msra.mxu0 %v4756_v7  ;;  %4124 = vmatpush1.bf16.msra.mxu1 %v4758_v8  ;;  %v3094_v7 = vld [vmem:[#allocation6 + $0xf0] sm:$0xff]  ;;  %v3087_v8 = vld [vmem:[#allocation6 + $0xb8] sm:$0xff] }
 0x266   : > { %4084 = vmatprep.subr.bf16.mxu0 %v4773_v11  ;;  %4125 = vmatprep.subr.bf16.mxu1 %v4775_v12  ;;  %v3095_v11 = vld [vmem:[#allocation6 + $0xf8] sm:$0xff]  ;;  %v4744_v12 = vcombine.low %v3070_v58, %v3078_v59  ;;  %v4761_v14 = vcombine.high %v3086_v6, %v3094_v7  ;;  %v4841_v58 = vcombine.high %v3166_v53, %v3174_v54 }
 0x267   : > { %v4763_v15 = vcombine.high %v3087_v8, %v3095_v11  ;;  %v4762_v20 = vcombine.low %v3087_v8, %v3095_v11  ;;  %v4856_v8 = vcombine.low %v3182_v60, %v3190_v61 }
 0x269   : > { %4085 = vmatpush1.bf16.msra.mxu0 %v4772_v51  ;;  %4126 = vmatpush1.bf16.msra.mxu1 %v4774_v17  ;;  %v3110_v51 = vld [vmem:[#allocation6 + $0x170] sm:$0xff]  ;;  %v3103_v17 = vld [vmem:[#allocation6 + $0x138] sm:$0xff] }
 0x26a   : > { %4086 = vmatprep.subr.bf16.mxu0 %v4789_v18  ;;  %4127 = vmatprep.subr.bf16.mxu1 %v4791_v19  ;;  %v3111_v18 = vld [vmem:[#allocation6 + $0x178] sm:$0xff]  ;;  %v4760_v19 = vcombine.low %v3086_v6, %v3094_v7  ;;  %v4777_v21 = vcombine.high %v3102_v16, %v3110_v51  ;;  %v4857_v6 = vcombine.high %v3182_v60, %v3190_v61  ;;  %v3193_v61 = vld [vmem:[%s5608_s4 + $0x8] sm:$0xff] }
 0x26b   : > { %v4779_v9 = vcombine.high %v3103_v17, %v3111_v18  ;;  %v4778_v37 = vcombine.low %v3103_v17, %v3111_v18 }
 0x26d   : > { %4087 = vmatpush1.bf16.msra.mxu0 %v4788_v23  ;;  %4128 = vmatpush1.bf16.msra.mxu1 %v4790_v24  ;;  %v3126_v23 = vld [vmem:[#allocation6 + $0x1f0] sm:$0xff]  ;;  %v3119_v24 = vld [vmem:[#allocation6 + $0x1b8] sm:$0xff] }
 0x26e   : > { %4088 = vmatprep.subr.bf16.mxu0 %v4805_v33  ;;  %4129 = vmatprep.subr.bf16.mxu1 %v4807_v35  ;;  %v3127_v33 = vld [vmem:[#allocation6 + $0x1f8] sm:$0xff]  ;;  %v4776_v35 = vcombine.low %v3102_v16, %v3110_v51  ;;  %v4793_v38 = vcombine.high %v3118_v22, %v3126_v23 }
 0x26f   : > { %v4795_v39 = vcombine.high %v3119_v24, %v3127_v33  ;;  %v4794_v10 = vcombine.low %v3119_v24, %v3127_v33 }
 0x271   : > { %4089 = vmatpush1.bf16.msra.mxu0 %v4804_v27  ;;  %4130 = vmatpush1.bf16.msra.mxu1 %v4806_v41  ;;  %v3142_v27 = vld [vmem:[#allocation6 + $0x270] sm:$0xff]  ;;  %v3135_v41 = vld [vmem:[#allocation6 + $0x238] sm:$0xff] }
 0x272   : > { %4090 = vmatprep.subr.bf16.mxu0 %v4821_v42  ;;  %4131 = vmatprep.subr.bf16.mxu1 %v4823_v43  ;;  %v3143_v42 = vld [vmem:[#allocation6 + $0x278] sm:$0xff]  ;;  %v4792_v43 = vcombine.low %v3118_v22, %v3126_v23  ;;  %v4809_v44 = vcombine.high %v3134_v40, %v3142_v27 }
 0x275   : > { %4091 = vmatpush1.bf16.msra.mxu0 %v4820_v49  ;;  %4132 = vmatpush1.bf16.msra.mxu1 %v4822_v50  ;;  %v3151_v49 = vld [vmem:[#allocation6 + $0x2b8] sm:$0xff] }
 0x276   : > { %4092 = vmatprep.subr.bf16.mxu0 %v4837_v52  ;;  %4133 = vmatprep.subr.bf16.mxu1 %v4839_v28  ;;  %v3159_v50 = vld [vmem:[#allocation6 + $0x2f8] sm:$0xff]  ;;  %v4808_v52 = vcombine.low %v3134_v40, %v3142_v27  ;;  %v4810_v28 = vcombine.low %v3135_v41, %v3143_v42 }
 0x277   : > { %v4827_v32 = vcombine.high %v3151_v49, %v3159_v50 }
 0x279   : > { %4093 = vmatpush1.bf16.msra.mxu0 %v4836_v55  ;;  %4134 = vmatpush1.bf16.msra.mxu1 %v4838_v48  ;;  %v3167_v55 = vld [vmem:[#allocation6 + $0x338] sm:$0xff] }
 0x27a   : > { %4094 = vmatprep.subr.bf16.mxu0 %v4853_v56  ;;  %4135 = vmatprep.subr.bf16.mxu1 %v4855_v57  ;;  %v3175_v48 = vld [vmem:[#allocation6 + $0x378] sm:$0xff]  ;;  %v4824_v56 = vcombine.low %v3150_v45, %v3158_v46  ;;  %v4826_v57 = vcombine.low %v3151_v49, %v3159_v50 }
 0x27b   : > { %v4843_v59 = vcombine.high %v3167_v55, %v3175_v48 }
 0x27d   : > { %4095 = vmatpush1.bf16.msra.mxu0 %v4852_v62  ;;  %4136 = vmatpush1.bf16.msra.mxu1 %v4854_v63  ;;  %v3183_v62 = vld [vmem:[#allocation6 + $0x3b8] sm:$0xff] }
 0x27e   : > { %4162 = vmatprep.subr.bf16.mxu0 %v4745_v0  ;;  %4203 = vmatprep.subr.bf16.mxu1 %v4747_v4  ;;  %v3191_v63 = vld [vmem:[#allocation6 + $0x3f8] sm:$0xff]  ;;  %v4840_v0 = vcombine.low %v3166_v53, %v3174_v54  ;;  %v4842_v4 = vcombine.low %v3167_v55, %v3175_v48 }
 0x27f   : > { %v4859_v7 = vcombine.high %v3183_v62, %v3191_v63  ;;  %v4858_v11 = vcombine.low %v3183_v62, %v3191_v63  ;;  %v3231_v62 = vrot.slane %v3193_v61, %v5470_v26  ;;  %v3239_v63 = vrot.slane %v3193_v61, %v5476_v30 }
 0x280   : > { %4113 = vmatmul.mubr.bf16.vlgmr.msra.gmra.mrb[8].mxu0 %v5518_v47  ;;  %4154 = vmatmul.mubr.bf16.vlgmr.msra.gmra.mrb[8].mxu1 %v5518_v47 }
 0x281   : > { %4163 = vmatpush1.bf16.msra.mxu0 %v4744_v12  ;;  %4204 = vmatpush1.bf16.msra.mxu1 %v4746_v13  ;;  %v3192_v12 = vld [vmem:[%s5608_s4] sm:$0xff]  ;;  %v5161_v13 = vmov 1983009808  }
 0x282   : > { %4164 = vmatprep.subr.bf16.mxu0 %v4761_v14  ;;  %4205 = vmatprep.subr.bf16.mxu1 %v4763_v15  ;;  %v4263_v14 = vunpack.c.l.s4 %v5161_v13  ;;  %v3199_v15 = vrot.slane %v3192_v12, %v5470_v26  ;;  %v3207_v16 = vrot.slane %v3192_v12, %v5476_v30  ;;  %v3203_v51 = vrot.slane %v3192_v12, %v5479_v31 }
 0x283   : > { %4194 = vmatprep.mubr.bf16.mxu0 %v5160_v36  ;;  %4235 = vmatprep.mubr.bf16.mxu1 %v5160_v36  ;;  %v4811_v36 = vcombine.high %v3135_v41, %v3143_v42  ;;  %v3211_v18 = vrot.slane %v3192_v12, %v5482_v34 }
 0x284   : > { %v4264_v17 = vunpack.c.0.s8 %v4263_v14 }
 0x285   : > { %4165 = vmatpush1.bf16.msra.mxu0 %v4760_v19  ;;  %4206 = vmatpush1.bf16.msra.mxu1 %v4762_v20 }
 0x286   : > { %4166 = vmatprep.subr.bf16.mxu0 %v4777_v21  ;;  %4207 = vmatprep.subr.bf16.mxu1 %v4779_v9  ;;  %v5542_v23 = vsub.s32 %v4264_v17, %v5467_v25  ;;  %v3219_v25 = vrot.slane %v3192_v12, %v5492_v2 }
 0x289   : > { %4167 = vmatpush1.bf16.msra.mxu0 %v4776_v35  ;;  %4208 = vmatpush1.bf16.msra.mxu1 %v4778_v37 }
 0x28a   : > { %4168 = vmatprep.subr.bf16.mxu0 %v4793_v38  ;;  %4209 = vmatprep.subr.bf16.mxu1 %v4795_v39 }
 0x28d   : > { %4169 = vmatpush1.bf16.msra.mxu0 %v4792_v43  ;;  %4210 = vmatpush1.bf16.msra.mxu1 %v4794_v10  ;;  %v3215_v10 = vrot.slane %v3192_v12, %v5489_v1 }
 0x28e   : > { %4170 = vmatprep.subr.bf16.mxu0 %v4809_v44  ;;  %4211 = vmatprep.subr.bf16.mxu1 %v4811_v36  ;;  %v3223_v44 = vrot.slane %v3192_v12, %v5495_v3  ;;  %v3227_v36 = vrot.slane %v3192_v12, %v5499_v5 }
 0x291   : > { %4171 = vmatpush1.bf16.msra.mxu0 %v4808_v52  ;;  %4212 = vmatpush1.bf16.msra.mxu1 %v4810_v28 }
 0x292   : > { %4172 = vmatprep.subr.bf16.mxu0 %v4825_v29  ;;  %4213 = vmatprep.subr.bf16.mxu1 %v4827_v32 }
 0x295   : > { %4173 = vmatpush1.bf16.msra.mxu0 %v4824_v56  ;;  %4214 = vmatpush1.bf16.msra.mxu1 %v4826_v57 }
 0x296   : > { %4174 = vmatprep.subr.bf16.mxu0 %v4841_v58  ;;  %4215 = vmatprep.subr.bf16.mxu1 %v4843_v59 }
 0x299   : > { %4175 = vmatpush1.bf16.msra.mxu0 %v4840_v0  ;;  %4216 = vmatpush1.bf16.msra.mxu1 %v4842_v4  ;;  %v3235_v0 = vrot.slane %v3193_v61, %v5479_v31  ;;  %v3243_v4 = vrot.slane %v3193_v61, %v5482_v34  ;;  %v3247_v34 = vrot.slane %v3193_v61, %v5489_v1 }
 0x29a   : > { %4176 = vmatprep.subr.bf16.mxu0 %v4857_v6  ;;  %4217 = vmatprep.subr.bf16.mxu1 %v4859_v7 }
 0x29d   : > { %4177 = vmatpush1.bf16.msra.mxu0 %v4856_v8  ;;  %4218 = vmatpush1.bf16.msra.mxu1 %v4858_v11 }
 0x2a0   : > { %4195 = vmatmul.mubr.bf16.vlgmr.msra.gmra.mrb[12].mxu0 %v5518_v47  ;;  %4236 = vmatmul.mubr.bf16.vlgmr.msra.gmra.mrb[12].mxu1 %v5518_v47 }
 0x313   : > { %v3950_v19 = vpop.f32.mrb[0].mxu0  ;;  %v3991_v21 = vpop.f32.mrb[0].mxu1 }
 0x314   : > { %v3951_v20 = vadd.f32 %v3950_v19, %v3199_v15  ;;  %v3952_v9 = vpop.f32.mrb[1].mxu0  ;;  %v3992_v47 = vadd.f32 %v3991_v21, %v3207_v16  ;;  %v3993_v24 = vpop.f32.mrb[1].mxu1  ;;  %v3255_v21 = vrot.slane %v3193_v61, %v5495_v3 }
 0x315   : > { %v3953_v22 = vadd.f32 %v3952_v9, %v3203_v51  ;;  %v3954_v33 = vpop.f32.mrb[2].mxu0  ;;  %v3994_v35 = vadd.f32 %v3993_v24, %v3211_v18  ;;  %v3995_v37 = vpop.f32.mrb[2].mxu1  ;;  %v3251_v9 = vrot.slane %v3193_v61, %v5492_v2 }
 0x316   : > { %v3955_v38 = vpop.f32.mrb[3].mxu0  ;;  %v3996_v40 = vpop.f32.mrb[3].mxu1 }
 0x317   : > { %v4260_v39 = vcombine.low %v3951_v20, %v3953_v22  ;;  %v4261_v27 = vcombine.low %v3992_v47, %v3994_v35  ;;  %v3259_v47 = vrot.slane %v3193_v61, %v5499_v5 }
 0x319   : > { %v4268_v41 = vrot.slane %v4260_v39, %v5542_v23  ;;  %v4275_v42 = vrot.slane %v4261_v27, %v5542_v23 }
 0x31b   : > { %v4276_v43 = vcombine.low %v4268_v41, %v4275_v42 }
 0x31d   : > { %4332 = vst [vmem:[#allocation8] sm:$0xff] %v4276_v43 }
 0x333   : > { %v4032_v45 = vpop.f32.mrb[4].mxu0  ;;  %v4073_v49 = vpop.f32.mrb[4].mxu1 }
 0x334   : > { %v4033_v46 = vadd.f32 %v4032_v45, %v3215_v10  ;;  %v4034_v50 = vpop.f32.mrb[5].mxu0  ;;  %v4074_v52 = vadd.f32 %v4073_v49, %v3223_v44  ;;  %v4075_v29 = vpop.f32.mrb[5].mxu1 }
 0x335   : > { %v4035_v28 = vadd.f32 %v4034_v50, %v3219_v25  ;;  %v4036_v32 = vpop.f32.mrb[6].mxu0  ;;  %v4076_v53 = vadd.f32 %v4075_v29, %v3227_v36  ;;  %v4077_v54 = vpop.f32.mrb[6].mxu1 }
 0x336   : > { %v4037_v55 = vpop.f32.mrb[7].mxu0  ;;  %v4078_v56 = vpop.f32.mrb[7].mxu1 }
 0x337   : > { %v4277_v48 = vcombine.low %v4033_v46, %v4035_v28  ;;  %v4278_v57 = vcombine.low %v4074_v52, %v4076_v53 }
 0x339   : > { %v4285_v58 = vrot.slane %v4277_v48, %v5542_v23  ;;  %v4292_v59 = vrot.slane %v4278_v57, %v5542_v23 }
 0x33b   : > { %v4293_v60 = vcombine.low %v4285_v58, %v4292_v59 }
 0x33d   : > { %4333 = vst [vmem:[#allocation8 + $0x8] sm:$0xff] %v4293_v60 }
 0x353   : > { %v4114_v6 = vpop.f32.mrb[8].mxu0  ;;  %v4155_v8 = vpop.f32.mrb[8].mxu1 }
 0x354   : > { %v4115_v7 = vadd.f32 %v4114_v6, %v3231_v62  ;;  %v4116_v11 = vpop.f32.mrb[9].mxu0  ;;  %v4156_v12 = vadd.f32 %v4155_v8, %v3239_v63  ;;  %v4157_v14 = vpop.f32.mrb[9].mxu1 }
 0x355   : > { %v4117_v13 = vadd.f32 %v4116_v11, %v3235_v0  ;;  %v4118_v15 = vpop.f32.mrb[10].mxu0  ;;  %v4158_v16 = vadd.f32 %v4157_v14, %v3243_v4  ;;  %v4159_v51 = vpop.f32.mrb[10].mxu1 }
 0x356   : > { %v4119_v17 = vpop.f32.mrb[11].mxu0  ;;  %v4160_v19 = vpop.f32.mrb[11].mxu1 }
 0x357   : > { %v4294_v18 = vcombine.low %v4115_v7, %v4117_v13  ;;  %v4295_v26 = vcombine.low %v4156_v12, %v4158_v16 }
 0x359   : > { %v4302_v30 = vrot.slane %v4294_v18, %v5542_v23  ;;  %v4309_v31 = vrot.slane %v4295_v26, %v5542_v23 }
 0x35b   : > { %v4310_v20 = vcombine.low %v4302_v30, %v4309_v31 }
 0x35d   : > { %4334 = vst [vmem:[#allocation8 + $0x10] sm:$0xff] %v4310_v20 }
 0x373   : > { %v4196_v22 = vpop.f32.mrb[12].mxu0  ;;  %v4237_v33 = vpop.f32.mrb[12].mxu1 }
 0x374   : > { %v4197_v24 = vadd.f32 %v4196_v22, %v3247_v34  ;;  %v4198_v35 = vpop.f32.mrb[13].mxu0  ;;  %v4238_v37 = vadd.f32 %v4237_v33, %v3255_v21  ;;  %v4239_v39 = vpop.f32.mrb[13].mxu1 }
 0x375   : > { %v4199_v38 = vadd.f32 %v4198_v35, %v3251_v9  ;;  %v4200_v40 = vpop.f32.mrb[14].mxu0  ;;  %v4240_v27 = vadd.f32 %v4239_v39, %v3259_v47  ;;  %v4241_v41 = vpop.f32.mrb[14].mxu1 }
 0x376   : > { %v4201_v42 = vpop.f32.mrb[15].mxu0  ;;  %v4242_v10 = vpop.f32.mrb[15].mxu1 }
 0x377   : > { %v4311_v43 = vcombine.low %v4197_v24, %v4199_v38  ;;  %v4312_v1 = vcombine.low %v4238_v37, %v4240_v27 }
 0x379   : > { %v4319_v3 = vrot.slane %v4311_v43, %v5542_v23  ;;  %v4326_v2 = vrot.slane %v4312_v1, %v5542_v23 }
 0x37b   : > { %v4327_v44 = vcombine.low %v4319_v3, %v4326_v2 }
 0x37d   : > { %4335 = vst [vmem:[#allocation8 + $0x18] sm:$0xff] %v4327_v44 }
 0x37e PF: > { %p5569_p9 = scmp.eq.s32.totalorder %s4427_s21, 1  ;;  %s5162_s30 = smov [#allocation8]  }
 0x37f   : > { %s4346_s6 = sshll.u32 %s5162_s30, 4  ;;  %s4347_s6 = int_to_ptr.vmem [resolvable:$true] %s4346_s6 }
 0x380   : > { %s5092_s7 = scalar_lea.vmem %s4347_s6, 512  ;;  %p5099_p13 = scmp.lt.s32.totalorder %s4347_s6, %s4347_s6 }
 0x381   : > { %p5093_p10 = scmp.ne.s32.totalorder %s4347_s6, %s5092_s7  ;;  %p5100_p0 = scmp.lt.s32.totalorder %s5092_s7, %s5092_s7 }
 0x383   : > { %p5094_p11 = pnand %p5093_p10, %p5569_p9  ;;  %p5101_p1 = por %p5100_p0, %p5099_p13 }
 0x385   : > { %p5095_p12 = pneg %p5094_p11 }
 0x387   : > { %p5102_p2 = pnand %p5101_p1, %p5095_p12 }
 0x389   : > { %5105 = shalt.err (!%p5102_p2)
}
 0x38a   : > { %s5106_s21 = scalar_lea.hbm %s5609_s5, 512 }
 0x38b   : > { %p5107_p5 = scmp.ne.s32.totalorder %s5609_s5, %s5106_s21  ;;  %p5112_p8 = scmp.lt.u32.totalorder %s5106_s21, %s5609_s5 }
 0x38d   : > { %p5108_p7 = pnand %p5107_p5, %p5569_p9 }
 0x38f   : > { %p5109_p3 = pneg %p5108_p7 }
 0x391   : > { %p5114_p6 = pnand %p5112_p8, %p5109_p3 }
 0x393   : > { %5117 = shalt.err (!%p5114_p6)
}
 0x394   : > { %4938 = dma.vmem_to_hbm [thread:$0]  (%p5569_p9), %s4347_s6, 512, %s5609_s5, [#allocation5]  }
 0x395   : > { %5139 = dma.done.wait (%p5569_p9), [#allocation5], 512  }
 0x396   : > { %5141 = vsyncadd (%p5569_p9), [#allocation5], 4294966784 }
 0x397 PF: > { %s18_s20 = sadd.s32 1, %s5152_s20   ;;  %s5623_s18 = smov %s5148_s19 }
 0x398   : > { %p15_p4 = scmp.ge.s32.totalorder %s18_s20, 4   ;;  %s5624_s19 = smov %s5626_s22 }
 0x39a   :  { %17 = sbr.rel (!%p15_p4) target bundleno = 4 (0x4), region = 87 }
 0x3a1   :  { %4359 = vsyncpa [#allocation4], 1 }
 0x3a2   :  { %4361 = vsyncpa [#allocation4 + $0x1], 1 }
 0x3a3   :  { %4362 = vsyncpa [#allocation7], 1 }
 0x3a4   :  { %4363 = vsyncpa [#allocation5], 1 }
 0x3a5   :  { %4365 = vsyncpa [#allocation5 + $0x1], 1 }

</bundles_post_ra>
